<compile_context>
chip_gen: v5e
topology: v5e:2x2
jax: 0.10.0
libtpu: 0.0.40
codegen_flags: <defaults>
</compile_context>

<pallas_src>
import functools

import jax
import jax.numpy as jnp
from jax import lax
from jax.experimental import pallas as pl
from jax.experimental.pallas import tpu as pltpu

_LANE = 128     # lane granule (last dim)
_SUBLANE = 8    # f32 sublane granule (second-to-last dim)

# PyTorch LSTM gate order is (i, f, g, o).  We pack to (f, i, o, g):
#   slot 0 = f (no roll), slot 1 = i, slot 2 = o (half-rotation), slot 3 = g.
_GATE_ORDER = (1, 0, 3, 2)    # new slot -> PyTorch gate index
_N_SIGMOID_SLOTS = 3          # slots 0..2 (f, i, o) sigmoid; slot 3 (g) tanh


def _round_up(x, m):
    return -(-x // m) * m


# ----------------------------------------------------------------------------
# Pallas kernel: fused LSTM stack + final projection
# ----------------------------------------------------------------------------
def decoder_kernel(x_ref, w_ih_ref, w_hh_ref, b_ref, fc_w_ref, fc_b_ref,
                   out_ref, xbuf, gbuf):
    """Everything resident in VMEM.

    Shapes (P = padded feature dim = 128, G = packed gate width = 4*S = 128,
            B multiple of 8):
      x_ref    (T, B, P)    time-major padded layer-0 inputs
      w_ih_ref (L, P, G)    gate order f|i|o|g, sigmoid slots pre-scaled by 0.5
      w_hh_ref (L, P, G)
      b_ref    (L, 1, G)    combined b_ih + b_hh (same scaling / order)
      fc_w_ref (P, Vp)
      fc_b_ref (1, Vp)
      out_ref  (T, B, Vp)   time-major logits
      xbuf     (T, B, P)    per-layer hidden activations   (VMEM scratch)
      gbuf     (T, B, G)    hoisted input projections      (VMEM scratch)
    """
    T, B, P = xbuf.shape
    G = gbuf.shape[2]
    S = G // 4                      # per-gate slot width (>= H)
    L = w_ih_ref.shape[0]

    # Constant lane masks / scales, built once (loops below are unrolled).
    lane = lax.broadcasted_iota(jnp.int32, (B, G), 1)
    sig_mask = lane < _N_SIGMOID_SLOTS * S
    post_scale = jnp.where(sig_mask, 0.5, 1.0)     # sigmoid = 0.5*tanh(x/2)+0.5
    post_bias = jnp.where(sig_mask, 0.5, 0.0)
    slot0_mask = lane < S                          # real cell-state lanes

    h0 = jnp.zeros((B, P), jnp.float32)
    c0 = jnp.zeros((B, G), jnp.float32)

    for layer in range(L):          # static unroll over layers (L is small)
        # ------------------------------------------------------------------
        # Hoisted input projection: one large MXU matmul, no recurrent dep.
        # Layer 0 reads x_ref directly (no VMEM->VMEM startup copy).
        # ------------------------------------------------------------------
        src = x_ref[...] if layer == 0 else xbuf[...]
        proj = jnp.dot(src.reshape(T * B, P), w_ih_ref[layer],
                       preferred_element_type=jnp.float32) + b_ref[layer]
        gbuf[...] = proj.reshape(T, B, G)

        # ------------------------------------------------------------------
        # Recurrence: only h @ W_hh + packed gate math per step.
        # h, c live in vregs (fori_loop carry), not VMEM.
        # ------------------------------------------------------------------
        def step(t, carry, layer=layer):
            h, c = carry
            gates = gbuf[t] + jnp.dot(h, w_hh_ref[layer],
                                      preferred_element_type=jnp.float32)
            t_all = jnp.tanh(gates)                      # one EUP pass, 128 lanes
            act = t_all * post_scale + post_bias         # [f_s | i_s | o_s | g_t]
            f_al = act                                   # f already at lanes 0:S
            i_al = pltpu.roll(act, 3 * S, 1)             # i (or g) -> lanes 0:S
            o_al = pltpu.roll(act, 2 * S, 1)             # o -> lanes 0:S
            g_al = pltpu.roll(act, S, 1)                 # g (or i) -> lanes 0:S
            c_new = jnp.where(slot0_mask, f_al * c + i_al * g_al, 0.0)
            h_new = o_al * jnp.tanh(c_new)               # exact 0 beyond lane S
            xbuf[t] = h_new
            return (h_new, c_new)

        lax.fori_loop(0, T, step, (h0, c0), unroll=True)

    # ----------------------------------------------------------------------
    # Fused output projection over all T*B rows (eval-mode dropout = identity).
    # ----------------------------------------------------------------------
    h_flat = xbuf[...].reshape(T * B, P)
    logits = jnp.dot(h_flat, fc_w_ref[...],
                     preferred_element_type=jnp.float32) + fc_b_ref[...]
    out_ref[...] = logits.reshape(T, B, out_ref.shape[2])


# ----------------------------------------------------------------------------
# pallas_call wrapper
# ----------------------------------------------------------------------------
def _vmem_spec():
    return pl.BlockSpec(memory_space=pltpu.MemorySpace.VMEM)


def decoder_pallas(kp, x_tm_padded):
    T, B_pad, P = x_tm_padded.shape
    G = kp["w_hh"].shape[2]
    Vp = kp["fc_w_t"].shape[1]
    return pl.pallas_call(
        decoder_kernel,
        out_shape=jax.ShapeDtypeStruct((T, B_pad, Vp), jnp.float32),
        in_specs=[_vmem_spec()] * 6,
        out_specs=_vmem_spec(),
        scratch_shapes=[
            pltpu.VMEM((T, B_pad, P), jnp.float32),   # xbuf
            pltpu.VMEM((T, B_pad, G), jnp.float32),   # gbuf (packed gates)
        ],
    )(x_tm_padded, kp["w_ih"], kp["w_hh"], kp["b"], kp["fc_w_t"], kp["fc_b"])


@functools.partial(jax.jit, static_argnames=("vocab_size",))
def decoder_forward(kp, features, captions, vocab_size):
    """features: (B, E) f32, captions: (B, T_cap) int32 -> (B, T_cap+1, V)."""
    emb_p = kp["embedding_p"]                         # (vocab, P), E zero-padded
    B, _ = captions.shape
    E = features.shape[1]
    P = emb_p.shape[1]

    # Build the input directly time-major: gather with transposed captions
    # (tiny int transpose) instead of transposing the (B,T,E) activations.
    emb_tm = emb_p[captions.T]                        # (T_cap, B, P)
    feat_p = jnp.pad(features, ((0, 0), (0, P - E)))  # (B, P)
    x = jnp.concatenate([feat_p[None], emb_tm], axis=0)   # (T, B, P)

    # B_pad must stay a multiple of 8 (sublane) for the free (T,B,P)<->(T*B,P)
    # reshapes inside the kernel.
    B_pad = _round_up(B, _SUBLANE)
    x = jnp.pad(x, ((0, 0), (0, B_pad - B), (0, 0)))

    out = decoder_pallas(kp, x)                       # (T, B_pad, Vp)
    # Only the small final logits get transposed back to batch-major.
    return jnp.transpose(out, (1, 0, 2))[:B, :, :vocab_size]


# ----------------------------------------------------------------------------
# Parameters: raw PyTorch-style init + packing for the kernel
# ----------------------------------------------------------------------------
def init_decoder_params(key, embedding_dim, hidden_dim, vocab_size, num_layers):
    keys = jax.random.split(key, 1 + 4 * num_layers + 2)
    params = {}
    # nn.Embedding default: N(0, 1)
    params["embedding"] = jax.random.normal(
        keys[0], (vocab_size, embedding_dim), jnp.float32)
    # nn.LSTM / nn.Linear default: U(-1/sqrt(H), 1/sqrt(H))
    k = 1.0 / jnp.sqrt(hidden_dim)
    lstm = []
    for layer in range(num_layers):
        in_dim = embedding_dim if layer == 0 else hidden_dim
        kw = keys[1 + 4 * layer: 1 + 4 * (layer + 1)]
        lstm.append(dict(
            w_ih=jax.random.uniform(kw[0], (4 * hidden_dim, in_dim), jnp.float32, -k, k),
            w_hh=jax.random.uniform(kw[1], (4 * hidden_dim, hidden_dim), jnp.float32, -k, k),
            b_ih=jax.random.uniform(kw[2], (4 * hidden_dim,), jnp.float32, -k, k),
            b_hh=jax.random.uniform(kw[3], (4 * hidden_dim,), jnp.float32, -k, k),
        ))
    params["lstm"] = lstm
    params["fc_w"] = jax.random.uniform(keys[-2], (vocab_size, hidden_dim), jnp.float32, -k, k)
    params["fc_b"] = jax.random.uniform(keys[-1], (vocab_size,), jnp.float32, -k, k)
    return params


def _pack_gate_matrix(w, in_dim, H, P, S):
    """(4H, in_dim) PyTorch layout -> (P, 4S): transposed, reordered to
    (f,i,o,g), sigmoid slots pre-scaled by 0.5 (tanh-based sigmoid), padded."""
    w_t = w.T                                          # (in_dim, 4H)
    out = jnp.zeros((P, 4 * S), jnp.float32)
    for slot, torch_gate in enumerate(_GATE_ORDER):
        scale = 0.5 if slot < _N_SIGMOID_SLOTS else 1.0
        out = out.at[:in_dim, slot * S: slot * S + H].set(
            scale * w_t[:, torch_gate * H:(torch_gate + 1) * H])
    return out


def _pack_gate_bias(b, H, S):
    out = jnp.zeros((1, 4 * S), jnp.float32)
    for slot, torch_gate in enumerate(_GATE_ORDER):
        scale = 0.5 if slot < _N_SIGMOID_SLOTS else 1.0
        out = out.at[0, slot * S: slot * S + H].set(
            scale * b[torch_gate * H:(torch_gate + 1) * H])
    return out


def prepare_kernel_params(raw, embedding_dim, hidden_dim, vocab_size, num_layers):
    P = max(_round_up(embedding_dim, _LANE), _round_up(hidden_dim, _LANE))
    Vp = _round_up(vocab_size, _LANE)
    H = hidden_dim
    G = _round_up(4 * H, _LANE)   # packed gate width
    S = G // 4                    # per-gate slot width
    # Packed-gate recurrence writes the (B, G) cell output straight into the
    # (B, P) activation buffer; this toy size satisfies G == P.
    assert G == P, (G, P)

    emb_p = jnp.pad(raw["embedding"], ((0, 0), (0, P - embedding_dim)))

    w_ih, w_hh, b = [], [], []
    for layer, lp in enumerate(raw["lstm"]):
        in_dim = embedding_dim if layer == 0 else hidden_dim
        w_ih.append(_pack_gate_matrix(lp["w_ih"], in_dim, H, P, S))
        w_hh.append(_pack_gate_matrix(lp["w_hh"], hidden_dim, H, P, S))
        b.append(_pack_gate_bias(lp["b_ih"] + lp["b_hh"], H, S))

    fc_w_t = jnp.zeros((P, Vp), jnp.float32).at[:H, :vocab_size].set(raw["fc_w"].T)
    fc_b = jnp.zeros((1, Vp), jnp.float32).at[0, :vocab_size].set(raw["fc_b"])

    return dict(
        embedding_p=emb_p,
        w_ih=jnp.stack(w_ih),       # (L, P, G)
        w_hh=jnp.stack(w_hh),       # (L, P, G)
        b=jnp.stack(b),             # (L, 1, G)
        fc_w_t=fc_w_t,              # (P, Vp)
        fc_b=fc_b,                  # (1, Vp)
    )


# ----------------------------------------------------------------------------
# Pure-JAX reference (built from the raw PyTorch-layout params)
# ----------------------------------------------------------------------------
def decoder_reference(raw, features, captions, hidden_dim):
    emb = raw["embedding"][captions]
    inputs = jnp.concatenate([features[:, None, :], emb], axis=1)
    B, T, _ = inputs.shape
    H = hidden_dim
    x = inputs
    for lp in raw["lstm"]:
        w_ih_t = lp["w_ih"].T
        w_hh_t = lp["w_hh"].T
        bias = (lp["b_ih"] + lp["b_hh"])[None, :]

        def step(carry, x_t, w_ih_t=w_ih_t, w_hh_t=w_hh_t, bias=bias):
            h, c = carry
            gates = x_t @ w_ih_t + h @ w_hh_t + bias
            i_g = jax.nn.sigmoid(gates[:, 0:H])
            f_g = jax.nn.sigmoid(gates[:, H:2 * H])
            g_g = jnp.tanh(gates[:, 2 * H:3 * H])
            o_g = jax.nn.sigmoid(gates[:, 3 * H:4 * H])
            c_new = f_g * c + i_g * g_g
            h_new = o_g * jnp.tanh(c_new)
            return (h_new, c_new), h_new

        init = (jnp.zeros((B, H), jnp.float32), jnp.zeros((B, H), jnp.float32))
        _, hs = lax.scan(step, init, jnp.transpose(x, (1, 0, 2)))
        x = jnp.transpose(hs, (1, 0, 2))
    return x @ raw["fc_w"].T + raw["fc_b"][None, :]


# ----------------------------------------------------------------------------
# Main
# ----------------------------------------------------------------------------
if __name__ == "__main__":
    embedding_dim = 32
    hidden_dim = 32
    vocab_size = 64
    num_layers = 2
    dropout_rate = 0.5   # eval-mode => identity
    batch = 2
    seq_cap = 8

    root = jax.random.PRNGKey(0)
    k_param, k_feat, k_cap = jax.random.split(root, 3)

    raw = init_decoder_params(k_param, embedding_dim, hidden_dim, vocab_size, num_layers)
    kparams = prepare_kernel_params(raw, embedding_dim, hidden_dim, vocab_size, num_layers)

    features = jax.random.normal(k_feat, (batch, embedding_dim), jnp.float32)
    captions = jax.random.randint(k_cap, (batch, seq_cap), 0, vocab_size, jnp.int32)

    out = decoder_forward(kparams, features, captions, vocab_size=vocab_size)
    out = jax.block_until_ready(out)

    ref = decoder_reference(raw, features, captions, hidden_dim)
    assert out.shape == (batch, seq_cap + 1, vocab_size), out.shape
    max_err = float(jnp.max(jnp.abs(out - ref)))
    assert jnp.allclose(out, ref, atol=1e-3, rtol=1e-3), max_err

    print("KERNEL_OK")
</pallas_src>

<mosaic_0001>
module attributes {stable_mosaic.version = 11 : i64} {
  func.func @decoder_kernel(%arg0: memref<9x8x128xf32, #tpu.memory_space<vmem>>, %arg1: memref<2x128x128xf32, #tpu.memory_space<vmem>>, %arg2: memref<2x128x128xf32, #tpu.memory_space<vmem>>, %arg3: memref<2x1x128xf32, #tpu.memory_space<vmem>>, %arg4: memref<128x128xf32, #tpu.memory_space<vmem>>, %arg5: memref<1x128xf32, #tpu.memory_space<vmem>>, %arg6: memref<9x8x128xf32, #tpu.memory_space<vmem>>, %arg7: memref<9x8x128xf32, #tpu.memory_space<vmem>>, %arg8: memref<9x8x128xf32, #tpu.memory_space<vmem>>) attributes {dimension_semantics = [], scalar_prefetch = 0 : i64, scratch_operands = 2 : i64, tpu.core_type = #tpu.core_type<tc>} {
    %0 = tpu.iota {dimensions = array<i32: 1>} : vector<8x128xi32>
    %c96_i32 = arith.constant 96 : i32
    %1 = vector.broadcast %c96_i32 : i32 to vector<8x128xi32>
    %2 = arith.cmpi slt, %0, %1 : vector<8x128xi32>
    %cst = arith.constant 5.000000e-01 : f32
    %cst_0 = arith.constant 1.000000e+00 : f32
    %3 = vector.broadcast %cst : f32 to vector<8x128xf32>
    %4 = vector.broadcast %cst_0 : f32 to vector<8x128xf32>
    %5 = arith.select %2, %3, %4 : vector<8x128xi1>, vector<8x128xf32>
    %cst_1 = arith.constant 5.000000e-01 : f32
    %cst_2 = arith.constant 0.000000e+00 : f32
    %6 = vector.broadcast %cst_1 : f32 to vector<8x128xf32>
    %7 = vector.broadcast %cst_2 : f32 to vector<8x128xf32>
    %8 = arith.select %2, %6, %7 : vector<8x128xi1>, vector<8x128xf32>
    %c32_i32 = arith.constant 32 : i32
    %9 = vector.broadcast %c32_i32 : i32 to vector<8x128xi32>
    %10 = arith.cmpi slt, %0, %9 : vector<8x128xi32>
    %cst_3 = arith.constant 0.000000e+00 : f32
    %11 = vector.broadcast %cst_3 : f32 to vector<8x128xf32>
    %cst_4 = arith.constant 0.000000e+00 : f32
    %12 = vector.broadcast %cst_4 : f32 to vector<8x128xf32>
    %c0 = arith.constant 0 : index
    %c0_5 = arith.constant 0 : index
    %c0_6 = arith.constant 0 : index
    %13 = vector.load %arg0[%c0, %c0_5, %c0_6] : memref<9x8x128xf32, #tpu.memory_space<vmem>>, vector<9x8x128xf32>
    %14 = vector.shape_cast %13 : vector<9x8x128xf32> to vector<72x128xf32>
    %c0_7 = arith.constant 0 : index
    %c0_8 = arith.constant 0 : index
    %c0_9 = arith.constant 0 : index
    %15 = vector.load %arg1[%c0_7, %c0_8, %c0_9] : memref<2x128x128xf32, #tpu.memory_space<vmem>>, vector<1x128x128xf32>
    %16 = vector.shape_cast %15 : vector<1x128x128xf32> to vector<128x128xf32>
    %cst_10 = arith.constant dense<0.000000e+00> : vector<72x128xf32>
    %17 = tpu.matmul %14, %16, %cst_10 {dimension_numbers = #tpu.dot_dimension_numbers<[1], [0], [0], [1], [0, 0, 1, 1], [], []>} : vector<72x128xf32>, vector<128x128xf32>, vector<72x128xf32> -> vector<72x128xf32>
    %c0_11 = arith.constant 0 : index
    %c0_12 = arith.constant 0 : index
    %c0_13 = arith.constant 0 : index
    %18 = vector.load %arg3[%c0_11, %c0_12, %c0_13] : memref<2x1x128xf32, #tpu.memory_space<vmem>>, vector<1x1x128xf32>
    %19 = vector.shape_cast %18 : vector<1x1x128xf32> to vector<1x128xf32>
    %20 = vector.broadcast %19 : vector<1x128xf32> to vector<72x128xf32>
    %21 = arith.addf %17, %20 : vector<72x128xf32>
    %22 = vector.shape_cast %21 : vector<72x128xf32> to vector<9x8x128xf32>
    %c0_14 = arith.constant 0 : index
    %c0_15 = arith.constant 0 : index
    %c0_16 = arith.constant 0 : index
    %23 = vector.load %arg8[%c0_14, %c0_15, %c0_16] : memref<9x8x128xf32, #tpu.memory_space<vmem>>, vector<9x8x128xf32>
    tpu.vector_store %arg8[%c0_14, %c0_15, %c0_16], %22 {strides = array<i32>} : memref<9x8x128xf32, #tpu.memory_space<vmem>>, vector<9x8x128xf32>,
    %c0_i32 = arith.constant 0 : i32
    %24 = arith.index_cast %c0_i32 : i32 to index
    %c0_17 = arith.constant 0 : index
    %c0_18 = arith.constant 0 : index
    %25 = vector.load %arg8[%24, %c0_17, %c0_18] : memref<9x8x128xf32, #tpu.memory_space<vmem>>, vector<1x8x128xf32>
    %26 = vector.shape_cast %25 : vector<1x8x128xf32> to vector<8x128xf32>
    %c0_19 = arith.constant 0 : index
    %c0_20 = arith.constant 0 : index
    %c0_21 = arith.constant 0 : index
    %27 = vector.load %arg2[%c0_19, %c0_20, %c0_21] : memref<2x128x128xf32, #tpu.memory_space<vmem>>, vector<1x128x128xf32>
    %28 = vector.shape_cast %27 : vector<1x128x128xf32> to vector<128x128xf32>
    %cst_22 = arith.constant dense<0.000000e+00> : vector<8x128xf32>
    %29 = tpu.matmul %11, %28, %cst_22 {dimension_numbers = #tpu.dot_dimension_numbers<[1], [0], [0], [1], [0, 0, 1, 1], [], []>} : vector<8x128xf32>, vector<128x128xf32>, vector<8x128xf32> -> vector<8x128xf32>
    %30 = arith.addf %26, %29 : vector<8x128xf32>
    %31 = math.tanh %30 : vector<8x128xf32>
    %32 = arith.mulf %31, %5 : vector<8x128xf32>
    %33 = arith.addf %32, %8 : vector<8x128xf32>
    %c96_i32_23 = arith.constant 96 : i32
    %34 = tpu.dynamic_rotate %33 by %c96_i32_23 dim 1 : vector<8x128xf32>, i32 -> vector<8x128xf32>
    %c64_i32 = arith.constant 64 : i32
    %35 = tpu.dynamic_rotate %33 by %c64_i32 dim 1 : vector<8x128xf32>, i32 -> vector<8x128xf32>
    %c32_i32_24 = arith.constant 32 : i32
    %36 = tpu.dynamic_rotate %33 by %c32_i32_24 dim 1 : vector<8x128xf32>, i32 -> vector<8x128xf32>
    %37 = arith.mulf %33, %12 : vector<8x128xf32>
    %38 = arith.mulf %34, %36 : vector<8x128xf32>
    %39 = arith.addf %37, %38 : vector<8x128xf32>
    %cst_25 = arith.constant 0.000000e+00 : f32
    %40 = vector.broadcast %cst_25 : f32 to vector<8x128xf32>
    %41 = arith.select %10, %39, %40 : vector<8x128xi1>, vector<8x128xf32>
    %42 = math.tanh %41 : vector<8x128xf32>
    %43 = arith.mulf %35, %42 : vector<8x128xf32>
    %44 = arith.index_cast %c0_i32 : i32 to index
    %c0_26 = arith.constant 0 : index
    %c0_27 = arith.constant 0 : index
    %45 = vector.load %arg7[%44, %c0_26, %c0_27] : memref<9x8x128xf32, #tpu.memory_space<vmem>>, vector<1x8x128xf32>
    %46 = vector.shape_cast %45 : vector<1x8x128xf32> to vector<8x128xf32>
    %47 = vector.shape_cast %43 : vector<8x128xf32> to vector<1x8x128xf32>
    tpu.vector_store %arg7[%44, %c0_26, %c0_27], %47 {strides = array<i32>} : memref<9x8x128xf32, #tpu.memory_space<vmem>>, vector<1x8x128xf32>,
    %c1_i32 = arith.constant 1 : i32
    %48 = arith.index_cast %c1_i32 : i32 to index
    %c0_28 = arith.constant 0 : index
    %c0_29 = arith.constant 0 : index
    %49 = vector.load %arg8[%48, %c0_28, %c0_29] : memref<9x8x128xf32, #tpu.memory_space<vmem>>, vector<1x8x128xf32>
    %50 = vector.shape_cast %49 : vector<1x8x128xf32> to vector<8x128xf32>
    %c0_30 = arith.constant 0 : index
    %c0_31 = arith.constant 0 : index
    %c0_32 = arith.constant 0 : index
    %51 = vector.load %arg2[%c0_30, %c0_31, %c0_32] : memref<2x128x128xf32, #tpu.memory_space<vmem>>, vector<1x128x128xf32>
    %52 = vector.shape_cast %51 : vector<1x128x128xf32> to vector<128x128xf32>
    %cst_33 = arith.constant dense<0.000000e+00> : vector<8x128xf32>
    %53 = tpu.matmul %43, %52, %cst_33 {dimension_numbers = #tpu.dot_dimension_numbers<[1], [0], [0], [1], [0, 0, 1, 1], [], []>} : vector<8x128xf32>, vector<128x128xf32>, vector<8x128xf32> -> vector<8x128xf32>
    %54 = arith.addf %50, %53 : vector<8x128xf32>
    %55 = math.tanh %54 : vector<8x128xf32>
    %56 = arith.mulf %55, %5 : vector<8x128xf32>
    %57 = arith.addf %56, %8 : vector<8x128xf32>
    %c96_i32_34 = arith.constant 96 : i32
    %58 = tpu.dynamic_rotate %57 by %c96_i32_34 dim 1 : vector<8x128xf32>, i32 -> vector<8x128xf32>
    %c64_i32_35 = arith.constant 64 : i32
    %59 = tpu.dynamic_rotate %57 by %c64_i32_35 dim 1 : vector<8x128xf32>, i32 -> vector<8x128xf32>
    %c32_i32_36 = arith.constant 32 : i32
    %60 = tpu.dynamic_rotate %57 by %c32_i32_36 dim 1 : vector<8x128xf32>, i32 -> vector<8x128xf32>
    %61 = arith.mulf %57, %41 : vector<8x128xf32>
    %62 = arith.mulf %58, %60 : vector<8x128xf32>
    %63 = arith.addf %61, %62 : vector<8x128xf32>
    %cst_37 = arith.constant 0.000000e+00 : f32
    %64 = vector.broadcast %cst_37 : f32 to vector<8x128xf32>
    %65 = arith.select %10, %63, %64 : vector<8x128xi1>, vector<8x128xf32>
    %66 = math.tanh %65 : vector<8x128xf32>
    %67 = arith.mulf %59, %66 : vector<8x128xf32>
    %68 = arith.index_cast %c1_i32 : i32 to index
    %c0_38 = arith.constant 0 : index
    %c0_39 = arith.constant 0 : index
    %69 = vector.load %arg7[%68, %c0_38, %c0_39] : memref<9x8x128xf32, #tpu.memory_space<vmem>>, vector<1x8x128xf32>
    %70 = vector.shape_cast %69 : vector<1x8x128xf32> to vector<8x128xf32>
    %71 = vector.shape_cast %67 : vector<8x128xf32> to vector<1x8x128xf32>
    tpu.vector_store %arg7[%68, %c0_38, %c0_39], %71 {strides = array<i32>} : memref<9x8x128xf32, #tpu.memory_space<vmem>>, vector<1x8x128xf32>,
    %c2_i32 = arith.constant 2 : i32
    %72 = arith.index_cast %c2_i32 : i32 to index
    %c0_40 = arith.constant 0 : index
    %c0_41 = arith.constant 0 : index
    %73 = vector.load %arg8[%72, %c0_40, %c0_41] : memref<9x8x128xf32, #tpu.memory_space<vmem>>, vector<1x8x128xf32>
    %74 = vector.shape_cast %73 : vector<1x8x128xf32> to vector<8x128xf32>
    %c0_42 = arith.constant 0 : index
    %c0_43 = arith.constant 0 : index
    %c0_44 = arith.constant 0 : index
    %75 = vector.load %arg2[%c0_42, %c0_43, %c0_44] : memref<2x128x128xf32, #tpu.memory_space<vmem>>, vector<1x128x128xf32>
    %76 = vector.shape_cast %75 : vector<1x128x128xf32> to vector<128x128xf32>
    %cst_45 = arith.constant dense<0.000000e+00> : vector<8x128xf32>
    %77 = tpu.matmul %67, %76, %cst_45 {dimension_numbers = #tpu.dot_dimension_numbers<[1], [0], [0], [1], [0, 0, 1, 1], [], []>} : vector<8x128xf32>, vector<128x128xf32>, vector<8x128xf32> -> vector<8x128xf32>
    %78 = arith.addf %74, %77 : vector<8x128xf32>
    %79 = math.tanh %78 : vector<8x128xf32>
    %80 = arith.mulf %79, %5 : vector<8x128xf32>
    %81 = arith.addf %80, %8 : vector<8x128xf32>
    %c96_i32_46 = arith.constant 96 : i32
    %82 = tpu.dynamic_rotate %81 by %c96_i32_46 dim 1 : vector<8x128xf32>, i32 -> vector<8x128xf32>
    %c64_i32_47 = arith.constant 64 : i32
    %83 = tpu.dynamic_rotate %81 by %c64_i32_47 dim 1 : vector<8x128xf32>, i32 -> vector<8x128xf32>
    %c32_i32_48 = arith.constant 32 : i32
    %84 = tpu.dynamic_rotate %81 by %c32_i32_48 dim 1 : vector<8x128xf32>, i32 -> vector<8x128xf32>
    %85 = arith.mulf %81, %65 : vector<8x128xf32>
    %86 = arith.mulf %82, %84 : vector<8x128xf32>
    %87 = arith.addf %85, %86 : vector<8x128xf32>
    %cst_49 = arith.constant 0.000000e+00 : f32
    %88 = vector.broadcast %cst_49 : f32 to vector<8x128xf32>
    %89 = arith.select %10, %87, %88 : vector<8x128xi1>, vector<8x128xf32>
    %90 = math.tanh %89 : vector<8x128xf32>
    %91 = arith.mulf %83, %90 : vector<8x128xf32>
    %92 = arith.index_cast %c2_i32 : i32 to index
    %c0_50 = arith.constant 0 : index
    %c0_51 = arith.constant 0 : index
    %93 = vector.load %arg7[%92, %c0_50, %c0_51] : memref<9x8x128xf32, #tpu.memory_space<vmem>>, vector<1x8x128xf32>
    %94 = vector.shape_cast %93 : vector<1x8x128xf32> to vector<8x128xf32>
    %95 = vector.shape_cast %91 : vector<8x128xf32> to vector<1x8x128xf32>
    tpu.vector_store %arg7[%92, %c0_50, %c0_51], %95 {strides = array<i32>} : memref<9x8x128xf32, #tpu.memory_space<vmem>>, vector<1x8x128xf32>,
    %c3_i32 = arith.constant 3 : i32
    %96 = arith.index_cast %c3_i32 : i32 to index
    %c0_52 = arith.constant 0 : index
    %c0_53 = arith.constant 0 : index
    %97 = vector.load %arg8[%96, %c0_52, %c0_53] : memref<9x8x128xf32, #tpu.memory_space<vmem>>, vector<1x8x128xf32>
    %98 = vector.shape_cast %97 : vector<1x8x128xf32> to vector<8x128xf32>
    %c0_54 = arith.constant 0 : index
    %c0_55 = arith.constant 0 : index
    %c0_56 = arith.constant 0 : index
    %99 = vector.load %arg2[%c0_54, %c0_55, %c0_56] : memref<2x128x128xf32, #tpu.memory_space<vmem>>, vector<1x128x128xf32>
    %100 = vector.shape_cast %99 : vector<1x128x128xf32> to vector<128x128xf32>
    %cst_57 = arith.constant dense<0.000000e+00> : vector<8x128xf32>
    %101 = tpu.matmul %91, %100, %cst_57 {dimension_numbers = #tpu.dot_dimension_numbers<[1], [0], [0], [1], [0, 0, 1, 1], [], []>} : vector<8x128xf32>, vector<128x128xf32>, vector<8x128xf32> -> vector<8x128xf32>
    %102 = arith.addf %98, %101 : vector<8x128xf32>
    %103 = math.tanh %102 : vector<8x128xf32>
    %104 = arith.mulf %103, %5 : vector<8x128xf32>
    %105 = arith.addf %104, %8 : vector<8x128xf32>
    %c96_i32_58 = arith.constant 96 : i32
    %106 = tpu.dynamic_rotate %105 by %c96_i32_58 dim 1 : vector<8x128xf32>, i32 -> vector<8x128xf32>
    %c64_i32_59 = arith.constant 64 : i32
    %107 = tpu.dynamic_rotate %105 by %c64_i32_59 dim 1 : vector<8x128xf32>, i32 -> vector<8x128xf32>
    %c32_i32_60 = arith.constant 32 : i32
    %108 = tpu.dynamic_rotate %105 by %c32_i32_60 dim 1 : vector<8x128xf32>, i32 -> vector<8x128xf32>
    %109 = arith.mulf %105, %89 : vector<8x128xf32>
    %110 = arith.mulf %106, %108 : vector<8x128xf32>
    %111 = arith.addf %109, %110 : vector<8x128xf32>
    %cst_61 = arith.constant 0.000000e+00 : f32
    %112 = vector.broadcast %cst_61 : f32 to vector<8x128xf32>
    %113 = arith.select %10, %111, %112 : vector<8x128xi1>, vector<8x128xf32>
    %114 = math.tanh %113 : vector<8x128xf32>
    %115 = arith.mulf %107, %114 : vector<8x128xf32>
    %116 = arith.index_cast %c3_i32 : i32 to index
    %c0_62 = arith.constant 0 : index
    %c0_63 = arith.constant 0 : index
    %117 = vector.load %arg7[%116, %c0_62, %c0_63] : memref<9x8x128xf32, #tpu.memory_space<vmem>>, vector<1x8x128xf32>
    %118 = vector.shape_cast %117 : vector<1x8x128xf32> to vector<8x128xf32>
    %119 = vector.shape_cast %115 : vector<8x128xf32> to vector<1x8x128xf32>
    tpu.vector_store %arg7[%116, %c0_62, %c0_63], %119 {strides = array<i32>} : memref<9x8x128xf32, #tpu.memory_space<vmem>>, vector<1x8x128xf32>,
    %c4_i32 = arith.constant 4 : i32
    %120 = arith.index_cast %c4_i32 : i32 to index
    %c0_64 = arith.constant 0 : index
    %c0_65 = arith.constant 0 : index
    %121 = vector.load %arg8[%120, %c0_64, %c0_65] : memref<9x8x128xf32, #tpu.memory_space<vmem>>, vector<1x8x128xf32>
    %122 = vector.shape_cast %121 : vector<1x8x128xf32> to vector<8x128xf32>
    %c0_66 = arith.constant 0 : index
    %c0_67 = arith.constant 0 : index
    %c0_68 = arith.constant 0 : index
    %123 = vector.load %arg2[%c0_66, %c0_67, %c0_68] : memref<2x128x128xf32, #tpu.memory_space<vmem>>, vector<1x128x128xf32>
    %124 = vector.shape_cast %123 : vector<1x128x128xf32> to vector<128x128xf32>
    %cst_69 = arith.constant dense<0.000000e+00> : vector<8x128xf32>
    %125 = tpu.matmul %115, %124, %cst_69 {dimension_numbers = #tpu.dot_dimension_numbers<[1], [0], [0], [1], [0, 0, 1, 1], [], []>} : vector<8x128xf32>, vector<128x128xf32>, vector<8x128xf32> -> vector<8x128xf32>
    %126 = arith.addf %122, %125 : vector<8x128xf32>
    %127 = math.tanh %126 : vector<8x128xf32>
    %128 = arith.mulf %127, %5 : vector<8x128xf32>
    %129 = arith.addf %128, %8 : vector<8x128xf32>
    %c96_i32_70 = arith.constant 96 : i32
    %130 = tpu.dynamic_rotate %129 by %c96_i32_70 dim 1 : vector<8x128xf32>, i32 -> vector<8x128xf32>
    %c64_i32_71 = arith.constant 64 : i32
    %131 = tpu.dynamic_rotate %129 by %c64_i32_71 dim 1 : vector<8x128xf32>, i32 -> vector<8x128xf32>
    %c32_i32_72 = arith.constant 32 : i32
    %132 = tpu.dynamic_rotate %129 by %c32_i32_72 dim 1 : vector<8x128xf32>, i32 -> vector<8x128xf32>
    %133 = arith.mulf %129, %113 : vector<8x128xf32>
    %134 = arith.mulf %130, %132 : vector<8x128xf32>
    %135 = arith.addf %133, %134 : vector<8x128xf32>
    %cst_73 = arith.constant 0.000000e+00 : f32
    %136 = vector.broadcast %cst_73 : f32 to vector<8x128xf32>
    %137 = arith.select %10, %135, %136 : vector<8x128xi1>, vector<8x128xf32>
    %138 = math.tanh %137 : vector<8x128xf32>
    %139 = arith.mulf %131, %138 : vector<8x128xf32>
    %140 = arith.index_cast %c4_i32 : i32 to index
    %c0_74 = arith.constant 0 : index
    %c0_75 = arith.constant 0 : index
    %141 = vector.load %arg7[%140, %c0_74, %c0_75] : memref<9x8x128xf32, #tpu.memory_space<vmem>>, vector<1x8x128xf32>
    %142 = vector.shape_cast %141 : vector<1x8x128xf32> to vector<8x128xf32>
    %143 = vector.shape_cast %139 : vector<8x128xf32> to vector<1x8x128xf32>
    tpu.vector_store %arg7[%140, %c0_74, %c0_75], %143 {strides = array<i32>} : memref<9x8x128xf32, #tpu.memory_space<vmem>>, vector<1x8x128xf32>,
    %c5_i32 = arith.constant 5 : i32
    %144 = arith.index_cast %c5_i32 : i32 to index
    %c0_76 = arith.constant 0 : index
    %c0_77 = arith.constant 0 : index
    %145 = vector.load %arg8[%144, %c0_76, %c0_77] : memref<9x8x128xf32, #tpu.memory_space<vmem>>, vector<1x8x128xf32>
    %146 = vector.shape_cast %145 : vector<1x8x128xf32> to vector<8x128xf32>
    %c0_78 = arith.constant 0 : index
    %c0_79 = arith.constant 0 : index
    %c0_80 = arith.constant 0 : index
    %147 = vector.load %arg2[%c0_78, %c0_79, %c0_80] : memref<2x128x128xf32, #tpu.memory_space<vmem>>, vector<1x128x128xf32>
    %148 = vector.shape_cast %147 : vector<1x128x128xf32> to vector<128x128xf32>
    %cst_81 = arith.constant dense<0.000000e+00> : vector<8x128xf32>
    %149 = tpu.matmul %139, %148, %cst_81 {dimension_numbers = #tpu.dot_dimension_numbers<[1], [0], [0], [1], [0, 0, 1, 1], [], []>} : vector<8x128xf32>, vector<128x128xf32>, vector<8x128xf32> -> vector<8x128xf32>
    %150 = arith.addf %146, %149 : vector<8x128xf32>
    %151 = math.tanh %150 : vector<8x128xf32>
    %152 = arith.mulf %151, %5 : vector<8x128xf32>
    %153 = arith.addf %152, %8 : vector<8x128xf32>
    %c96_i32_82 = arith.constant 96 : i32
    %154 = tpu.dynamic_rotate %153 by %c96_i32_82 dim 1 : vector<8x128xf32>, i32 -> vector<8x128xf32>
    %c64_i32_83 = arith.constant 64 : i32
    %155 = tpu.dynamic_rotate %153 by %c64_i32_83 dim 1 : vector<8x128xf32>, i32 -> vector<8x128xf32>
    %c32_i32_84 = arith.constant 32 : i32
    %156 = tpu.dynamic_rotate %153 by %c32_i32_84 dim 1 : vector<8x128xf32>, i32 -> vector<8x128xf32>
    %157 = arith.mulf %153, %137 : vector<8x128xf32>
    %158 = arith.mulf %154, %156 : vector<8x128xf32>
    %159 = arith.addf %157, %158 : vector<8x128xf32>
    %cst_85 = arith.constant 0.000000e+00 : f32
    %160 = vector.broadcast %cst_85 : f32 to vector<8x128xf32>
    %161 = arith.select %10, %159, %160 : vector<8x128xi1>, vector<8x128xf32>
    %162 = math.tanh %161 : vector<8x128xf32>
    %163 = arith.mulf %155, %162 : vector<8x128xf32>
    %164 = arith.index_cast %c5_i32 : i32 to index
    %c0_86 = arith.constant 0 : index
    %c0_87 = arith.constant 0 : index
    %165 = vector.load %arg7[%164, %c0_86, %c0_87] : memref<9x8x128xf32, #tpu.memory_space<vmem>>, vector<1x8x128xf32>
    %166 = vector.shape_cast %165 : vector<1x8x128xf32> to vector<8x128xf32>
    %167 = vector.shape_cast %163 : vector<8x128xf32> to vector<1x8x128xf32>
    tpu.vector_store %arg7[%164, %c0_86, %c0_87], %167 {strides = array<i32>} : memref<9x8x128xf32, #tpu.memory_space<vmem>>, vector<1x8x128xf32>,
    %c6_i32 = arith.constant 6 : i32
    %168 = arith.index_cast %c6_i32 : i32 to index
    %c0_88 = arith.constant 0 : index
    %c0_89 = arith.constant 0 : index
    %169 = vector.load %arg8[%168, %c0_88, %c0_89] : memref<9x8x128xf32, #tpu.memory_space<vmem>>, vector<1x8x128xf32>
    %170 = vector.shape_cast %169 : vector<1x8x128xf32> to vector<8x128xf32>
    %c0_90 = arith.constant 0 : index
    %c0_91 = arith.constant 0 : index
    %c0_92 = arith.constant 0 : index
    %171 = vector.load %arg2[%c0_90, %c0_91, %c0_92] : memref<2x128x128xf32, #tpu.memory_space<vmem>>, vector<1x128x128xf32>
    %172 = vector.shape_cast %171 : vector<1x128x128xf32> to vector<128x128xf32>
    %cst_93 = arith.constant dense<0.000000e+00> : vector<8x128xf32>
    %173 = tpu.matmul %163, %172, %cst_93 {dimension_numbers = #tpu.dot_dimension_numbers<[1], [0], [0], [1], [0, 0, 1, 1], [], []>} : vector<8x128xf32>, vector<128x128xf32>, vector<8x128xf32> -> vector<8x128xf32>
    %174 = arith.addf %170, %173 : vector<8x128xf32>
    %175 = math.tanh %174 : vector<8x128xf32>
    %176 = arith.mulf %175, %5 : vector<8x128xf32>
    %177 = arith.addf %176, %8 : vector<8x128xf32>
    %c96_i32_94 = arith.constant 96 : i32
    %178 = tpu.dynamic_rotate %177 by %c96_i32_94 dim 1 : vector<8x128xf32>, i32 -> vector<8x128xf32>
    %c64_i32_95 = arith.constant 64 : i32
    %179 = tpu.dynamic_rotate %177 by %c64_i32_95 dim 1 : vector<8x128xf32>, i32 -> vector<8x128xf32>
    %c32_i32_96 = arith.constant 32 : i32
    %180 = tpu.dynamic_rotate %177 by %c32_i32_96 dim 1 : vector<8x128xf32>, i32 -> vector<8x128xf32>
    %181 = arith.mulf %177, %161 : vector<8x128xf32>
    %182 = arith.mulf %178, %180 : vector<8x128xf32>
    %183 = arith.addf %181, %182 : vector<8x128xf32>
    %cst_97 = arith.constant 0.000000e+00 : f32
    %184 = vector.broadcast %cst_97 : f32 to vector<8x128xf32>
    %185 = arith.select %10, %183, %184 : vector<8x128xi1>, vector<8x128xf32>
    %186 = math.tanh %185 : vector<8x128xf32>
    %187 = arith.mulf %179, %186 : vector<8x128xf32>
    %188 = arith.index_cast %c6_i32 : i32 to index
    %c0_98 = arith.constant 0 : index
    %c0_99 = arith.constant 0 : index
    %189 = vector.load %arg7[%188, %c0_98, %c0_99] : memref<9x8x128xf32, #tpu.memory_space<vmem>>, vector<1x8x128xf32>
    %190 = vector.shape_cast %189 : vector<1x8x128xf32> to vector<8x128xf32>
    %191 = vector.shape_cast %187 : vector<8x128xf32> to vector<1x8x128xf32>
    tpu.vector_store %arg7[%188, %c0_98, %c0_99], %191 {strides = array<i32>} : memref<9x8x128xf32, #tpu.memory_space<vmem>>, vector<1x8x128xf32>,
    %c7_i32 = arith.constant 7 : i32
    %192 = arith.index_cast %c7_i32 : i32 to index
    %c0_100 = arith.constant 0 : index
    %c0_101 = arith.constant 0 : index
    %193 = vector.load %arg8[%192, %c0_100, %c0_101] : memref<9x8x128xf32, #tpu.memory_space<vmem>>, vector<1x8x128xf32>
    %194 = vector.shape_cast %193 : vector<1x8x128xf32> to vector<8x128xf32>
    %c0_102 = arith.constant 0 : index
    %c0_103 = arith.constant 0 : index
    %c0_104 = arith.constant 0 : index
    %195 = vector.load %arg2[%c0_102, %c0_103, %c0_104] : memref<2x128x128xf32, #tpu.memory_space<vmem>>, vector<1x128x128xf32>
    %196 = vector.shape_cast %195 : vector<1x128x128xf32> to vector<128x128xf32>
    %cst_105 = arith.constant dense<0.000000e+00> : vector<8x128xf32>
    %197 = tpu.matmul %187, %196, %cst_105 {dimension_numbers = #tpu.dot_dimension_numbers<[1], [0], [0], [1], [0, 0, 1, 1], [], []>} : vector<8x128xf32>, vector<128x128xf32>, vector<8x128xf32> -> vector<8x128xf32>
    %198 = arith.addf %194, %197 : vector<8x128xf32>
    %199 = math.tanh %198 : vector<8x128xf32>
    %200 = arith.mulf %199, %5 : vector<8x128xf32>
    %201 = arith.addf %200, %8 : vector<8x128xf32>
    %c96_i32_106 = arith.constant 96 : i32
    %202 = tpu.dynamic_rotate %201 by %c96_i32_106 dim 1 : vector<8x128xf32>, i32 -> vector<8x128xf32>
    %c64_i32_107 = arith.constant 64 : i32
    %203 = tpu.dynamic_rotate %201 by %c64_i32_107 dim 1 : vector<8x128xf32>, i32 -> vector<8x128xf32>
    %c32_i32_108 = arith.constant 32 : i32
    %204 = tpu.dynamic_rotate %201 by %c32_i32_108 dim 1 : vector<8x128xf32>, i32 -> vector<8x128xf32>
    %205 = arith.mulf %201, %185 : vector<8x128xf32>
    %206 = arith.mulf %202, %204 : vector<8x128xf32>
    %207 = arith.addf %205, %206 : vector<8x128xf32>
    %cst_109 = arith.constant 0.000000e+00 : f32
    %208 = vector.broadcast %cst_109 : f32 to vector<8x128xf32>
    %209 = arith.select %10, %207, %208 : vector<8x128xi1>, vector<8x128xf32>
    %210 = math.tanh %209 : vector<8x128xf32>
    %211 = arith.mulf %203, %210 : vector<8x128xf32>
    %212 = arith.index_cast %c7_i32 : i32 to index
    %c0_110 = arith.constant 0 : index
    %c0_111 = arith.constant 0 : index
    %213 = vector.load %arg7[%212, %c0_110, %c0_111] : memref<9x8x128xf32, #tpu.memory_space<vmem>>, vector<1x8x128xf32>
    %214 = vector.shape_cast %213 : vector<1x8x128xf32> to vector<8x128xf32>
    %215 = vector.shape_cast %211 : vector<8x128xf32> to vector<1x8x128xf32>
    tpu.vector_store %arg7[%212, %c0_110, %c0_111], %215 {strides = array<i32>} : memref<9x8x128xf32, #tpu.memory_space<vmem>>, vector<1x8x128xf32>,
    %c8_i32 = arith.constant 8 : i32
    %216 = arith.index_cast %c8_i32 : i32 to index
    %c0_112 = arith.constant 0 : index
    %c0_113 = arith.constant 0 : index
    %217 = vector.load %arg8[%216, %c0_112, %c0_113] : memref<9x8x128xf32, #tpu.memory_space<vmem>>, vector<1x8x128xf32>
    %218 = vector.shape_cast %217 : vector<1x8x128xf32> to vector<8x128xf32>
    %c0_114 = arith.constant 0 : index
    %c0_115 = arith.constant 0 : index
    %c0_116 = arith.constant 0 : index
    %219 = vector.load %arg2[%c0_114, %c0_115, %c0_116] : memref<2x128x128xf32, #tpu.memory_space<vmem>>, vector<1x128x128xf32>
    %220 = vector.shape_cast %219 : vector<1x128x128xf32> to vector<128x128xf32>
    %cst_117 = arith.constant dense<0.000000e+00> : vector<8x128xf32>
    %221 = tpu.matmul %211, %220, %cst_117 {dimension_numbers = #tpu.dot_dimension_numbers<[1], [0], [0], [1], [0, 0, 1, 1], [], []>} : vector<8x128xf32>, vector<128x128xf32>, vector<8x128xf32> -> vector<8x128xf32>
    %222 = arith.addf %218, %221 : vector<8x128xf32>
    %223 = math.tanh %222 : vector<8x128xf32>
    %224 = arith.mulf %223, %5 : vector<8x128xf32>
    %225 = arith.addf %224, %8 : vector<8x128xf32>
    %c96_i32_118 = arith.constant 96 : i32
    %226 = tpu.dynamic_rotate %225 by %c96_i32_118 dim 1 : vector<8x128xf32>, i32 -> vector<8x128xf32>
    %c64_i32_119 = arith.constant 64 : i32
    %227 = tpu.dynamic_rotate %225 by %c64_i32_119 dim 1 : vector<8x128xf32>, i32 -> vector<8x128xf32>
    %c32_i32_120 = arith.constant 32 : i32
    %228 = tpu.dynamic_rotate %225 by %c32_i32_120 dim 1 : vector<8x128xf32>, i32 -> vector<8x128xf32>
    %229 = arith.mulf %225, %209 : vector<8x128xf32>
    %230 = arith.mulf %226, %228 : vector<8x128xf32>
    %231 = arith.addf %229, %230 : vector<8x128xf32>
    %cst_121 = arith.constant 0.000000e+00 : f32
    %232 = vector.broadcast %cst_121 : f32 to vector<8x128xf32>
    %233 = arith.select %10, %231, %232 : vector<8x128xi1>, vector<8x128xf32>
    %234 = math.tanh %233 : vector<8x128xf32>
    %235 = arith.mulf %227, %234 : vector<8x128xf32>
    %236 = arith.index_cast %c8_i32 : i32 to index
    %c0_122 = arith.constant 0 : index
    %c0_123 = arith.constant 0 : index
    %237 = vector.load %arg7[%236, %c0_122, %c0_123] : memref<9x8x128xf32, #tpu.memory_space<vmem>>, vector<1x8x128xf32>
    %238 = vector.shape_cast %237 : vector<1x8x128xf32> to vector<8x128xf32>
    %239 = vector.shape_cast %235 : vector<8x128xf32> to vector<1x8x128xf32>
    tpu.vector_store %arg7[%236, %c0_122, %c0_123], %239 {strides = array<i32>} : memref<9x8x128xf32, #tpu.memory_space<vmem>>, vector<1x8x128xf32>,
    %c9_i32 = arith.constant 9 : i32
    %c0_124 = arith.constant 0 : index
    %c0_125 = arith.constant 0 : index
    %c0_126 = arith.constant 0 : index
    %240 = vector.load %arg7[%c0_124, %c0_125, %c0_126] : memref<9x8x128xf32, #tpu.memory_space<vmem>>, vector<9x8x128xf32>
    %241 = vector.shape_cast %240 : vector<9x8x128xf32> to vector<72x128xf32>
    %c1 = arith.constant 1 : index
    %c0_127 = arith.constant 0 : index
    %c0_128 = arith.constant 0 : index
    %242 = vector.load %arg1[%c1, %c0_127, %c0_128] : memref<2x128x128xf32, #tpu.memory_space<vmem>>, vector<1x128x128xf32>
    %243 = vector.shape_cast %242 : vector<1x128x128xf32> to vector<128x128xf32>
    %cst_129 = arith.constant dense<0.000000e+00> : vector<72x128xf32>
    %244 = tpu.matmul %241, %243, %cst_129 {dimension_numbers = #tpu.dot_dimension_numbers<[1], [0], [0], [1], [0, 0, 1, 1], [], []>} : vector<72x128xf32>, vector<128x128xf32>, vector<72x128xf32> -> vector<72x128xf32>
    %c1_130 = arith.constant 1 : index
    %c0_131 = arith.constant 0 : index
    %c0_132 = arith.constant 0 : index
    %245 = vector.load %arg3[%c1_130, %c0_131, %c0_132] : memref<2x1x128xf32, #tpu.memory_space<vmem>>, vector<1x1x128xf32>
    %246 = vector.shape_cast %245 : vector<1x1x128xf32> to vector<1x128xf32>
    %247 = vector.broadcast %246 : vector<1x128xf32> to vector<72x128xf32>
    %248 = arith.addf %244, %247 : vector<72x128xf32>
    %249 = vector.shape_cast %248 : vector<72x128xf32> to vector<9x8x128xf32>
    %c0_133 = arith.constant 0 : index
    %c0_134 = arith.constant 0 : index
    %c0_135 = arith.constant 0 : index
    %250 = vector.load %arg8[%c0_133, %c0_134, %c0_135] : memref<9x8x128xf32, #tpu.memory_space<vmem>>, vector<9x8x128xf32>
    tpu.vector_store %arg8[%c0_133, %c0_134, %c0_135], %249 {strides = array<i32>} : memref<9x8x128xf32, #tpu.memory_space<vmem>>, vector<9x8x128xf32>,
    %c0_i32_136 = arith.constant 0 : i32
    %251 = arith.index_cast %c0_i32_136 : i32 to index
    %c0_137 = arith.constant 0 : index
    %c0_138 = arith.constant 0 : index
    %252 = vector.load %arg8[%251, %c0_137, %c0_138] : memref<9x8x128xf32, #tpu.memory_space<vmem>>, vector<1x8x128xf32>
    %253 = vector.shape_cast %252 : vector<1x8x128xf32> to vector<8x128xf32>
    %c1_139 = arith.constant 1 : index
    %c0_140 = arith.constant 0 : index
    %c0_141 = arith.constant 0 : index
    %254 = vector.load %arg2[%c1_139, %c0_140, %c0_141] : memref<2x128x128xf32, #tpu.memory_space<vmem>>, vector<1x128x128xf32>
    %255 = vector.shape_cast %254 : vector<1x128x128xf32> to vector<128x128xf32>
    %cst_142 = arith.constant dense<0.000000e+00> : vector<8x128xf32>
    %256 = tpu.matmul %11, %255, %cst_142 {dimension_numbers = #tpu.dot_dimension_numbers<[1], [0], [0], [1], [0, 0, 1, 1], [], []>} : vector<8x128xf32>, vector<128x128xf32>, vector<8x128xf32> -> vector<8x128xf32>
    %257 = arith.addf %253, %256 : vector<8x128xf32>
    %258 = math.tanh %257 : vector<8x128xf32>
    %259 = arith.mulf %258, %5 : vector<8x128xf32>
    %260 = arith.addf %259, %8 : vector<8x128xf32>
    %c96_i32_143 = arith.constant 96 : i32
    %261 = tpu.dynamic_rotate %260 by %c96_i32_143 dim 1 : vector<8x128xf32>, i32 -> vector<8x128xf32>
    %c64_i32_144 = arith.constant 64 : i32
    %262 = tpu.dynamic_rotate %260 by %c64_i32_144 dim 1 : vector<8x128xf32>, i32 -> vector<8x128xf32>
    %c32_i32_145 = arith.constant 32 : i32
    %263 = tpu.dynamic_rotate %260 by %c32_i32_145 dim 1 : vector<8x128xf32>, i32 -> vector<8x128xf32>
    %264 = arith.mulf %260, %12 : vector<8x128xf32>
    %265 = arith.mulf %261, %263 : vector<8x128xf32>
    %266 = arith.addf %264, %265 : vector<8x128xf32>
    %cst_146 = arith.constant 0.000000e+00 : f32
    %267 = vector.broadcast %cst_146 : f32 to vector<8x128xf32>
    %268 = arith.select %10, %266, %267 : vector<8x128xi1>, vector<8x128xf32>
    %269 = math.tanh %268 : vector<8x128xf32>
    %270 = arith.mulf %262, %269 : vector<8x128xf32>
    %271 = arith.index_cast %c0_i32_136 : i32 to index
    %c0_147 = arith.constant 0 : index
    %c0_148 = arith.constant 0 : index
    %272 = vector.load %arg7[%271, %c0_147, %c0_148] : memref<9x8x128xf32, #tpu.memory_space<vmem>>, vector<1x8x128xf32>
    %273 = vector.shape_cast %272 : vector<1x8x128xf32> to vector<8x128xf32>
    %274 = vector.shape_cast %270 : vector<8x128xf32> to vector<1x8x128xf32>
    tpu.vector_store %arg7[%271, %c0_147, %c0_148], %274 {strides = array<i32>} : memref<9x8x128xf32, #tpu.memory_space<vmem>>, vector<1x8x128xf32>,
    %c1_i32_149 = arith.constant 1 : i32
    %275 = arith.index_cast %c1_i32_149 : i32 to index
    %c0_150 = arith.constant 0 : index
    %c0_151 = arith.constant 0 : index
    %276 = vector.load %arg8[%275, %c0_150, %c0_151] : memref<9x8x128xf32, #tpu.memory_space<vmem>>, vector<1x8x128xf32>
    %277 = vector.shape_cast %276 : vector<1x8x128xf32> to vector<8x128xf32>
    %c1_152 = arith.constant 1 : index
    %c0_153 = arith.constant 0 : index
    %c0_154 = arith.constant 0 : index
    %278 = vector.load %arg2[%c1_152, %c0_153, %c0_154] : memref<2x128x128xf32, #tpu.memory_space<vmem>>, vector<1x128x128xf32>
    %279 = vector.shape_cast %278 : vector<1x128x128xf32> to vector<128x128xf32>
    %cst_155 = arith.constant dense<0.000000e+00> : vector<8x128xf32>
    %280 = tpu.matmul %270, %279, %cst_155 {dimension_numbers = #tpu.dot_dimension_numbers<[1], [0], [0], [1], [0, 0, 1, 1], [], []>} : vector<8x128xf32>, vector<128x128xf32>, vector<8x128xf32> -> vector<8x128xf32>
    %281 = arith.addf %277, %280 : vector<8x128xf32>
    %282 = math.tanh %281 : vector<8x128xf32>
    %283 = arith.mulf %282, %5 : vector<8x128xf32>
    %284 = arith.addf %283, %8 : vector<8x128xf32>
    %c96_i32_156 = arith.constant 96 : i32
    %285 = tpu.dynamic_rotate %284 by %c96_i32_156 dim 1 : vector<8x128xf32>, i32 -> vector<8x128xf32>
    %c64_i32_157 = arith.constant 64 : i32
    %286 = tpu.dynamic_rotate %284 by %c64_i32_157 dim 1 : vector<8x128xf32>, i32 -> vector<8x128xf32>
    %c32_i32_158 = arith.constant 32 : i32
    %287 = tpu.dynamic_rotate %284 by %c32_i32_158 dim 1 : vector<8x128xf32>, i32 -> vector<8x128xf32>
    %288 = arith.mulf %284, %268 : vector<8x128xf32>
    %289 = arith.mulf %285, %287 : vector<8x128xf32>
    %290 = arith.addf %288, %289 : vector<8x128xf32>
    %cst_159 = arith.constant 0.000000e+00 : f32
    %291 = vector.broadcast %cst_159 : f32 to vector<8x128xf32>
    %292 = arith.select %10, %290, %291 : vector<8x128xi1>, vector<8x128xf32>
    %293 = math.tanh %292 : vector<8x128xf32>
    %294 = arith.mulf %286, %293 : vector<8x128xf32>
    %295 = arith.index_cast %c1_i32_149 : i32 to index
    %c0_160 = arith.constant 0 : index
    %c0_161 = arith.constant 0 : index
    %296 = vector.load %arg7[%295, %c0_160, %c0_161] : memref<9x8x128xf32, #tpu.memory_space<vmem>>, vector<1x8x128xf32>
    %297 = vector.shape_cast %296 : vector<1x8x128xf32> to vector<8x128xf32>
    %298 = vector.shape_cast %294 : vector<8x128xf32> to vector<1x8x128xf32>
    tpu.vector_store %arg7[%295, %c0_160, %c0_161], %298 {strides = array<i32>} : memref<9x8x128xf32, #tpu.memory_space<vmem>>, vector<1x8x128xf32>,
    %c2_i32_162 = arith.constant 2 : i32
    %299 = arith.index_cast %c2_i32_162 : i32 to index
    %c0_163 = arith.constant 0 : index
    %c0_164 = arith.constant 0 : index
    %300 = vector.load %arg8[%299, %c0_163, %c0_164] : memref<9x8x128xf32, #tpu.memory_space<vmem>>, vector<1x8x128xf32>
    %301 = vector.shape_cast %300 : vector<1x8x128xf32> to vector<8x128xf32>
    %c1_165 = arith.constant 1 : index
    %c0_166 = arith.constant 0 : index
    %c0_167 = arith.constant 0 : index
    %302 = vector.load %arg2[%c1_165, %c0_166, %c0_167] : memref<2x128x128xf32, #tpu.memory_space<vmem>>, vector<1x128x128xf32>
    %303 = vector.shape_cast %302 : vector<1x128x128xf32> to vector<128x128xf32>
    %cst_168 = arith.constant dense<0.000000e+00> : vector<8x128xf32>
    %304 = tpu.matmul %294, %303, %cst_168 {dimension_numbers = #tpu.dot_dimension_numbers<[1], [0], [0], [1], [0, 0, 1, 1], [], []>} : vector<8x128xf32>, vector<128x128xf32>, vector<8x128xf32> -> vector<8x128xf32>
    %305 = arith.addf %301, %304 : vector<8x128xf32>
    %306 = math.tanh %305 : vector<8x128xf32>
    %307 = arith.mulf %306, %5 : vector<8x128xf32>
    %308 = arith.addf %307, %8 : vector<8x128xf32>
    %c96_i32_169 = arith.constant 96 : i32
    %309 = tpu.dynamic_rotate %308 by %c96_i32_169 dim 1 : vector<8x128xf32>, i32 -> vector<8x128xf32>
    %c64_i32_170 = arith.constant 64 : i32
    %310 = tpu.dynamic_rotate %308 by %c64_i32_170 dim 1 : vector<8x128xf32>, i32 -> vector<8x128xf32>
    %c32_i32_171 = arith.constant 32 : i32
    %311 = tpu.dynamic_rotate %308 by %c32_i32_171 dim 1 : vector<8x128xf32>, i32 -> vector<8x128xf32>
    %312 = arith.mulf %308, %292 : vector<8x128xf32>
    %313 = arith.mulf %309, %311 : vector<8x128xf32>
    %314 = arith.addf %312, %313 : vector<8x128xf32>
    %cst_172 = arith.constant 0.000000e+00 : f32
    %315 = vector.broadcast %cst_172 : f32 to vector<8x128xf32>
    %316 = arith.select %10, %314, %315 : vector<8x128xi1>, vector<8x128xf32>
    %317 = math.tanh %316 : vector<8x128xf32>
    %318 = arith.mulf %310, %317 : vector<8x128xf32>
    %319 = arith.index_cast %c2_i32_162 : i32 to index
    %c0_173 = arith.constant 0 : index
    %c0_174 = arith.constant 0 : index
    %320 = vector.load %arg7[%319, %c0_173, %c0_174] : memref<9x8x128xf32, #tpu.memory_space<vmem>>, vector<1x8x128xf32>
    %321 = vector.shape_cast %320 : vector<1x8x128xf32> to vector<8x128xf32>
    %322 = vector.shape_cast %318 : vector<8x128xf32> to vector<1x8x128xf32>
    tpu.vector_store %arg7[%319, %c0_173, %c0_174], %322 {strides = array<i32>} : memref<9x8x128xf32, #tpu.memory_space<vmem>>, vector<1x8x128xf32>,
    %c3_i32_175 = arith.constant 3 : i32
    %323 = arith.index_cast %c3_i32_175 : i32 to index
    %c0_176 = arith.constant 0 : index
    %c0_177 = arith.constant 0 : index
    %324 = vector.load %arg8[%323, %c0_176, %c0_177] : memref<9x8x128xf32, #tpu.memory_space<vmem>>, vector<1x8x128xf32>
    %325 = vector.shape_cast %324 : vector<1x8x128xf32> to vector<8x128xf32>
    %c1_178 = arith.constant 1 : index
    %c0_179 = arith.constant 0 : index
    %c0_180 = arith.constant 0 : index
    %326 = vector.load %arg2[%c1_178, %c0_179, %c0_180] : memref<2x128x128xf32, #tpu.memory_space<vmem>>, vector<1x128x128xf32>
    %327 = vector.shape_cast %326 : vector<1x128x128xf32> to vector<128x128xf32>
    %cst_181 = arith.constant dense<0.000000e+00> : vector<8x128xf32>
    %328 = tpu.matmul %318, %327, %cst_181 {dimension_numbers = #tpu.dot_dimension_numbers<[1], [0], [0], [1], [0, 0, 1, 1], [], []>} : vector<8x128xf32>, vector<128x128xf32>, vector<8x128xf32> -> vector<8x128xf32>
    %329 = arith.addf %325, %328 : vector<8x128xf32>
    %330 = math.tanh %329 : vector<8x128xf32>
    %331 = arith.mulf %330, %5 : vector<8x128xf32>
    %332 = arith.addf %331, %8 : vector<8x128xf32>
    %c96_i32_182 = arith.constant 96 : i32
    %333 = tpu.dynamic_rotate %332 by %c96_i32_182 dim 1 : vector<8x128xf32>, i32 -> vector<8x128xf32>
    %c64_i32_183 = arith.constant 64 : i32
    %334 = tpu.dynamic_rotate %332 by %c64_i32_183 dim 1 : vector<8x128xf32>, i32 -> vector<8x128xf32>
    %c32_i32_184 = arith.constant 32 : i32
    %335 = tpu.dynamic_rotate %332 by %c32_i32_184 dim 1 : vector<8x128xf32>, i32 -> vector<8x128xf32>
    %336 = arith.mulf %332, %316 : vector<8x128xf32>
    %337 = arith.mulf %333, %335 : vector<8x128xf32>
    %338 = arith.addf %336, %337 : vector<8x128xf32>
    %cst_185 = arith.constant 0.000000e+00 : f32
    %339 = vector.broadcast %cst_185 : f32 to vector<8x128xf32>
    %340 = arith.select %10, %338, %339 : vector<8x128xi1>, vector<8x128xf32>
    %341 = math.tanh %340 : vector<8x128xf32>
    %342 = arith.mulf %334, %341 : vector<8x128xf32>
    %343 = arith.index_cast %c3_i32_175 : i32 to index
    %c0_186 = arith.constant 0 : index
    %c0_187 = arith.constant 0 : index
    %344 = vector.load %arg7[%343, %c0_186, %c0_187] : memref<9x8x128xf32, #tpu.memory_space<vmem>>, vector<1x8x128xf32>
    %345 = vector.shape_cast %344 : vector<1x8x128xf32> to vector<8x128xf32>
    %346 = vector.shape_cast %342 : vector<8x128xf32> to vector<1x8x128xf32>
    tpu.vector_store %arg7[%343, %c0_186, %c0_187], %346 {strides = array<i32>} : memref<9x8x128xf32, #tpu.memory_space<vmem>>, vector<1x8x128xf32>,
    %c4_i32_188 = arith.constant 4 : i32
    %347 = arith.index_cast %c4_i32_188 : i32 to index
    %c0_189 = arith.constant 0 : index
    %c0_190 = arith.constant 0 : index
    %348 = vector.load %arg8[%347, %c0_189, %c0_190] : memref<9x8x128xf32, #tpu.memory_space<vmem>>, vector<1x8x128xf32>
    %349 = vector.shape_cast %348 : vector<1x8x128xf32> to vector<8x128xf32>
    %c1_191 = arith.constant 1 : index
    %c0_192 = arith.constant 0 : index
    %c0_193 = arith.constant 0 : index
    %350 = vector.load %arg2[%c1_191, %c0_192, %c0_193] : memref<2x128x128xf32, #tpu.memory_space<vmem>>, vector<1x128x128xf32>
    %351 = vector.shape_cast %350 : vector<1x128x128xf32> to vector<128x128xf32>
    %cst_194 = arith.constant dense<0.000000e+00> : vector<8x128xf32>
    %352 = tpu.matmul %342, %351, %cst_194 {dimension_numbers = #tpu.dot_dimension_numbers<[1], [0], [0], [1], [0, 0, 1, 1], [], []>} : vector<8x128xf32>, vector<128x128xf32>, vector<8x128xf32> -> vector<8x128xf32>
    %353 = arith.addf %349, %352 : vector<8x128xf32>
    %354 = math.tanh %353 : vector<8x128xf32>
    %355 = arith.mulf %354, %5 : vector<8x128xf32>
    %356 = arith.addf %355, %8 : vector<8x128xf32>
    %c96_i32_195 = arith.constant 96 : i32
    %357 = tpu.dynamic_rotate %356 by %c96_i32_195 dim 1 : vector<8x128xf32>, i32 -> vector<8x128xf32>
    %c64_i32_196 = arith.constant 64 : i32
    %358 = tpu.dynamic_rotate %356 by %c64_i32_196 dim 1 : vector<8x128xf32>, i32 -> vector<8x128xf32>
    %c32_i32_197 = arith.constant 32 : i32
    %359 = tpu.dynamic_rotate %356 by %c32_i32_197 dim 1 : vector<8x128xf32>, i32 -> vector<8x128xf32>
    %360 = arith.mulf %356, %340 : vector<8x128xf32>
    %361 = arith.mulf %357, %359 : vector<8x128xf32>
    %362 = arith.addf %360, %361 : vector<8x128xf32>
    %cst_198 = arith.constant 0.000000e+00 : f32
    %363 = vector.broadcast %cst_198 : f32 to vector<8x128xf32>
    %364 = arith.select %10, %362, %363 : vector<8x128xi1>, vector<8x128xf32>
    %365 = math.tanh %364 : vector<8x128xf32>
    %366 = arith.mulf %358, %365 : vector<8x128xf32>
    %367 = arith.index_cast %c4_i32_188 : i32 to index
    %c0_199 = arith.constant 0 : index
    %c0_200 = arith.constant 0 : index
    %368 = vector.load %arg7[%367, %c0_199, %c0_200] : memref<9x8x128xf32, #tpu.memory_space<vmem>>, vector<1x8x128xf32>
    %369 = vector.shape_cast %368 : vector<1x8x128xf32> to vector<8x128xf32>
    %370 = vector.shape_cast %366 : vector<8x128xf32> to vector<1x8x128xf32>
    tpu.vector_store %arg7[%367, %c0_199, %c0_200], %370 {strides = array<i32>} : memref<9x8x128xf32, #tpu.memory_space<vmem>>, vector<1x8x128xf32>,
    %c5_i32_201 = arith.constant 5 : i32
    %371 = arith.index_cast %c5_i32_201 : i32 to index
    %c0_202 = arith.constant 0 : index
    %c0_203 = arith.constant 0 : index
    %372 = vector.load %arg8[%371, %c0_202, %c0_203] : memref<9x8x128xf32, #tpu.memory_space<vmem>>, vector<1x8x128xf32>
    %373 = vector.shape_cast %372 : vector<1x8x128xf32> to vector<8x128xf32>
    %c1_204 = arith.constant 1 : index
    %c0_205 = arith.constant 0 : index
    %c0_206 = arith.constant 0 : index
    %374 = vector.load %arg2[%c1_204, %c0_205, %c0_206] : memref<2x128x128xf32, #tpu.memory_space<vmem>>, vector<1x128x128xf32>
    %375 = vector.shape_cast %374 : vector<1x128x128xf32> to vector<128x128xf32>
    %cst_207 = arith.constant dense<0.000000e+00> : vector<8x128xf32>
    %376 = tpu.matmul %366, %375, %cst_207 {dimension_numbers = #tpu.dot_dimension_numbers<[1], [0], [0], [1], [0, 0, 1, 1], [], []>} : vector<8x128xf32>, vector<128x128xf32>, vector<8x128xf32> -> vector<8x128xf32>
    %377 = arith.addf %373, %376 : vector<8x128xf32>
    %378 = math.tanh %377 : vector<8x128xf32>
    %379 = arith.mulf %378, %5 : vector<8x128xf32>
    %380 = arith.addf %379, %8 : vector<8x128xf32>
    %c96_i32_208 = arith.constant 96 : i32
    %381 = tpu.dynamic_rotate %380 by %c96_i32_208 dim 1 : vector<8x128xf32>, i32 -> vector<8x128xf32>
    %c64_i32_209 = arith.constant 64 : i32
    %382 = tpu.dynamic_rotate %380 by %c64_i32_209 dim 1 : vector<8x128xf32>, i32 -> vector<8x128xf32>
    %c32_i32_210 = arith.constant 32 : i32
    %383 = tpu.dynamic_rotate %380 by %c32_i32_210 dim 1 : vector<8x128xf32>, i32 -> vector<8x128xf32>
    %384 = arith.mulf %380, %364 : vector<8x128xf32>
    %385 = arith.mulf %381, %383 : vector<8x128xf32>
    %386 = arith.addf %384, %385 : vector<8x128xf32>
    %cst_211 = arith.constant 0.000000e+00 : f32
    %387 = vector.broadcast %cst_211 : f32 to vector<8x128xf32>
    %388 = arith.select %10, %386, %387 : vector<8x128xi1>, vector<8x128xf32>
    %389 = math.tanh %388 : vector<8x128xf32>
    %390 = arith.mulf %382, %389 : vector<8x128xf32>
    %391 = arith.index_cast %c5_i32_201 : i32 to index
    %c0_212 = arith.constant 0 : index
    %c0_213 = arith.constant 0 : index
    %392 = vector.load %arg7[%391, %c0_212, %c0_213] : memref<9x8x128xf32, #tpu.memory_space<vmem>>, vector<1x8x128xf32>
    %393 = vector.shape_cast %392 : vector<1x8x128xf32> to vector<8x128xf32>
    %394 = vector.shape_cast %390 : vector<8x128xf32> to vector<1x8x128xf32>
    tpu.vector_store %arg7[%391, %c0_212, %c0_213], %394 {strides = array<i32>} : memref<9x8x128xf32, #tpu.memory_space<vmem>>, vector<1x8x128xf32>,
    %c6_i32_214 = arith.constant 6 : i32
    %395 = arith.index_cast %c6_i32_214 : i32 to index
    %c0_215 = arith.constant 0 : index
    %c0_216 = arith.constant 0 : index
    %396 = vector.load %arg8[%395, %c0_215, %c0_216] : memref<9x8x128xf32, #tpu.memory_space<vmem>>, vector<1x8x128xf32>
    %397 = vector.shape_cast %396 : vector<1x8x128xf32> to vector<8x128xf32>
    %c1_217 = arith.constant 1 : index
    %c0_218 = arith.constant 0 : index
    %c0_219 = arith.constant 0 : index
    %398 = vector.load %arg2[%c1_217, %c0_218, %c0_219] : memref<2x128x128xf32, #tpu.memory_space<vmem>>, vector<1x128x128xf32>
    %399 = vector.shape_cast %398 : vector<1x128x128xf32> to vector<128x128xf32>
    %cst_220 = arith.constant dense<0.000000e+00> : vector<8x128xf32>
    %400 = tpu.matmul %390, %399, %cst_220 {dimension_numbers = #tpu.dot_dimension_numbers<[1], [0], [0], [1], [0, 0, 1, 1], [], []>} : vector<8x128xf32>, vector<128x128xf32>, vector<8x128xf32> -> vector<8x128xf32>
    %401 = arith.addf %397, %400 : vector<8x128xf32>
    %402 = math.tanh %401 : vector<8x128xf32>
    %403 = arith.mulf %402, %5 : vector<8x128xf32>
    %404 = arith.addf %403, %8 : vector<8x128xf32>
    %c96_i32_221 = arith.constant 96 : i32
    %405 = tpu.dynamic_rotate %404 by %c96_i32_221 dim 1 : vector<8x128xf32>, i32 -> vector<8x128xf32>
    %c64_i32_222 = arith.constant 64 : i32
    %406 = tpu.dynamic_rotate %404 by %c64_i32_222 dim 1 : vector<8x128xf32>, i32 -> vector<8x128xf32>
    %c32_i32_223 = arith.constant 32 : i32
    %407 = tpu.dynamic_rotate %404 by %c32_i32_223 dim 1 : vector<8x128xf32>, i32 -> vector<8x128xf32>
    %408 = arith.mulf %404, %388 : vector<8x128xf32>
    %409 = arith.mulf %405, %407 : vector<8x128xf32>
    %410 = arith.addf %408, %409 : vector<8x128xf32>
    %cst_224 = arith.constant 0.000000e+00 : f32
    %411 = vector.broadcast %cst_224 : f32 to vector<8x128xf32>
    %412 = arith.select %10, %410, %411 : vector<8x128xi1>, vector<8x128xf32>
    %413 = math.tanh %412 : vector<8x128xf32>
    %414 = arith.mulf %406, %413 : vector<8x128xf32>
    %415 = arith.index_cast %c6_i32_214 : i32 to index
    %c0_225 = arith.constant 0 : index
    %c0_226 = arith.constant 0 : index
    %416 = vector.load %arg7[%415, %c0_225, %c0_226] : memref<9x8x128xf32, #tpu.memory_space<vmem>>, vector<1x8x128xf32>
    %417 = vector.shape_cast %416 : vector<1x8x128xf32> to vector<8x128xf32>
    %418 = vector.shape_cast %414 : vector<8x128xf32> to vector<1x8x128xf32>
    tpu.vector_store %arg7[%415, %c0_225, %c0_226], %418 {strides = array<i32>} : memref<9x8x128xf32, #tpu.memory_space<vmem>>, vector<1x8x128xf32>,
    %c7_i32_227 = arith.constant 7 : i32
    %419 = arith.index_cast %c7_i32_227 : i32 to index
    %c0_228 = arith.constant 0 : index
    %c0_229 = arith.constant 0 : index
    %420 = vector.load %arg8[%419, %c0_228, %c0_229] : memref<9x8x128xf32, #tpu.memory_space<vmem>>, vector<1x8x128xf32>
    %421 = vector.shape_cast %420 : vector<1x8x128xf32> to vector<8x128xf32>
    %c1_230 = arith.constant 1 : index
    %c0_231 = arith.constant 0 : index
    %c0_232 = arith.constant 0 : index
    %422 = vector.load %arg2[%c1_230, %c0_231, %c0_232] : memref<2x128x128xf32, #tpu.memory_space<vmem>>, vector<1x128x128xf32>
    %423 = vector.shape_cast %422 : vector<1x128x128xf32> to vector<128x128xf32>
    %cst_233 = arith.constant dense<0.000000e+00> : vector<8x128xf32>
    %424 = tpu.matmul %414, %423, %cst_233 {dimension_numbers = #tpu.dot_dimension_numbers<[1], [0], [0], [1], [0, 0, 1, 1], [], []>} : vector<8x128xf32>, vector<128x128xf32>, vector<8x128xf32> -> vector<8x128xf32>
    %425 = arith.addf %421, %424 : vector<8x128xf32>
    %426 = math.tanh %425 : vector<8x128xf32>
    %427 = arith.mulf %426, %5 : vector<8x128xf32>
    %428 = arith.addf %427, %8 : vector<8x128xf32>
    %c96_i32_234 = arith.constant 96 : i32
    %429 = tpu.dynamic_rotate %428 by %c96_i32_234 dim 1 : vector<8x128xf32>, i32 -> vector<8x128xf32>
    %c64_i32_235 = arith.constant 64 : i32
    %430 = tpu.dynamic_rotate %428 by %c64_i32_235 dim 1 : vector<8x128xf32>, i32 -> vector<8x128xf32>
    %c32_i32_236 = arith.constant 32 : i32
    %431 = tpu.dynamic_rotate %428 by %c32_i32_236 dim 1 : vector<8x128xf32>, i32 -> vector<8x128xf32>
    %432 = arith.mulf %428, %412 : vector<8x128xf32>
    %433 = arith.mulf %429, %431 : vector<8x128xf32>
    %434 = arith.addf %432, %433 : vector<8x128xf32>
    %cst_237 = arith.constant 0.000000e+00 : f32
    %435 = vector.broadcast %cst_237 : f32 to vector<8x128xf32>
    %436 = arith.select %10, %434, %435 : vector<8x128xi1>, vector<8x128xf32>
    %437 = math.tanh %436 : vector<8x128xf32>
    %438 = arith.mulf %430, %437 : vector<8x128xf32>
    %439 = arith.index_cast %c7_i32_227 : i32 to index
    %c0_238 = arith.constant 0 : index
    %c0_239 = arith.constant 0 : index
    %440 = vector.load %arg7[%439, %c0_238, %c0_239] : memref<9x8x128xf32, #tpu.memory_space<vmem>>, vector<1x8x128xf32>
    %441 = vector.shape_cast %440 : vector<1x8x128xf32> to vector<8x128xf32>
    %442 = vector.shape_cast %438 : vector<8x128xf32> to vector<1x8x128xf32>
    tpu.vector_store %arg7[%439, %c0_238, %c0_239], %442 {strides = array<i32>} : memref<9x8x128xf32, #tpu.memory_space<vmem>>, vector<1x8x128xf32>,
    %c8_i32_240 = arith.constant 8 : i32
    %443 = arith.index_cast %c8_i32_240 : i32 to index
    %c0_241 = arith.constant 0 : index
    %c0_242 = arith.constant 0 : index
    %444 = vector.load %arg8[%443, %c0_241, %c0_242] : memref<9x8x128xf32, #tpu.memory_space<vmem>>, vector<1x8x128xf32>
    %445 = vector.shape_cast %444 : vector<1x8x128xf32> to vector<8x128xf32>
    %c1_243 = arith.constant 1 : index
    %c0_244 = arith.constant 0 : index
    %c0_245 = arith.constant 0 : index
    %446 = vector.load %arg2[%c1_243, %c0_244, %c0_245] : memref<2x128x128xf32, #tpu.memory_space<vmem>>, vector<1x128x128xf32>
    %447 = vector.shape_cast %446 : vector<1x128x128xf32> to vector<128x128xf32>
    %cst_246 = arith.constant dense<0.000000e+00> : vector<8x128xf32>
    %448 = tpu.matmul %438, %447, %cst_246 {dimension_numbers = #tpu.dot_dimension_numbers<[1], [0], [0], [1], [0, 0, 1, 1], [], []>} : vector<8x128xf32>, vector<128x128xf32>, vector<8x128xf32> -> vector<8x128xf32>
    %449 = arith.addf %445, %448 : vector<8x128xf32>
    %450 = math.tanh %449 : vector<8x128xf32>
    %451 = arith.mulf %450, %5 : vector<8x128xf32>
    %452 = arith.addf %451, %8 : vector<8x128xf32>
    %c96_i32_247 = arith.constant 96 : i32
    %453 = tpu.dynamic_rotate %452 by %c96_i32_247 dim 1 : vector<8x128xf32>, i32 -> vector<8x128xf32>
    %c64_i32_248 = arith.constant 64 : i32
    %454 = tpu.dynamic_rotate %452 by %c64_i32_248 dim 1 : vector<8x128xf32>, i32 -> vector<8x128xf32>
    %c32_i32_249 = arith.constant 32 : i32
    %455 = tpu.dynamic_rotate %452 by %c32_i32_249 dim 1 : vector<8x128xf32>, i32 -> vector<8x128xf32>
    %456 = arith.mulf %452, %436 : vector<8x128xf32>
    %457 = arith.mulf %453, %455 : vector<8x128xf32>
    %458 = arith.addf %456, %457 : vector<8x128xf32>
    %cst_250 = arith.constant 0.000000e+00 : f32
    %459 = vector.broadcast %cst_250 : f32 to vector<8x128xf32>
    %460 = arith.select %10, %458, %459 : vector<8x128xi1>, vector<8x128xf32>
    %461 = math.tanh %460 : vector<8x128xf32>
    %462 = arith.mulf %454, %461 : vector<8x128xf32>
    %463 = arith.index_cast %c8_i32_240 : i32 to index
    %c0_251 = arith.constant 0 : index
    %c0_252 = arith.constant 0 : index
    %464 = vector.load %arg7[%463, %c0_251, %c0_252] : memref<9x8x128xf32, #tpu.memory_space<vmem>>, vector<1x8x128xf32>
    %465 = vector.shape_cast %464 : vector<1x8x128xf32> to vector<8x128xf32>
    %466 = vector.shape_cast %462 : vector<8x128xf32> to vector<1x8x128xf32>
    tpu.vector_store %arg7[%463, %c0_251, %c0_252], %466 {strides = array<i32>} : memref<9x8x128xf32, #tpu.memory_space<vmem>>, vector<1x8x128xf32>,
    %c9_i32_253 = arith.constant 9 : i32
    %c0_254 = arith.constant 0 : index
    %c0_255 = arith.constant 0 : index
    %c0_256 = arith.constant 0 : index
    %467 = vector.load %arg7[%c0_254, %c0_255, %c0_256] : memref<9x8x128xf32, #tpu.memory_space<vmem>>, vector<9x8x128xf32>
    %468 = vector.shape_cast %467 : vector<9x8x128xf32> to vector<72x128xf32>
    %c0_257 = arith.constant 0 : index
    %c0_258 = arith.constant 0 : index
    %469 = vector.load %arg4[%c0_257, %c0_258] : memref<128x128xf32, #tpu.memory_space<vmem>>, vector<128x128xf32>
    %cst_259 = arith.constant dense<0.000000e+00> : vector<72x128xf32>
    %470 = tpu.matmul %468, %469, %cst_259 {dimension_numbers = #tpu.dot_dimension_numbers<[1], [0], [0], [1], [0, 0, 1, 1], [], []>} : vector<72x128xf32>, vector<128x128xf32>, vector<72x128xf32> -> vector<72x128xf32>
    %c0_260 = arith.constant 0 : index
    %c0_261 = arith.constant 0 : index
    %471 = vector.load %arg5[%c0_260, %c0_261] : memref<1x128xf32, #tpu.memory_space<vmem>>, vector<1x128xf32>
    %472 = vector.broadcast %471 : vector<1x128xf32> to vector<72x128xf32>
    %473 = arith.addf %470, %472 : vector<72x128xf32>
    %474 = vector.shape_cast %473 : vector<72x128xf32> to vector<9x8x128xf32>
    %c0_262 = arith.constant 0 : index
    %c0_263 = arith.constant 0 : index
    %c0_264 = arith.constant 0 : index
    %475 = vector.load %arg6[%c0_262, %c0_263, %c0_264] : memref<9x8x128xf32, #tpu.memory_space<vmem>>, vector<9x8x128xf32>
    tpu.vector_store %arg6[%c0_262, %c0_263, %c0_264], %474 {strides = array<i32>} : memref<9x8x128xf32, #tpu.memory_space<vmem>>, vector<9x8x128xf32>,
    return
  }
}

</mosaic_0001>

<bundles_post_ra>
// kernel: decoder_forward.1
= control target key start
LH: loop header
LB: loop body
LE: loop exit
PB: predicated region body
PF: predicated region fallthrough
CT: control target
= control target key end

     0   :  { %11 = vsyncpa [#allocation5], 0  ;;  %s2208_s0 = inlined_call_operand.vmem [shape: f32[9,8,128], index: 0, kind: input, shape index: {}]   ;;  %s2209_s1 = inlined_call_operand.vmem [shape: f32[2,128,128], index: 1, kind: input, shape index: {}]   ;;  %s2210_s2 = inlined_call_operand.hbm [shape: f32[2,128,128], index: 2, kind: input, shape index: {}]   ;;  %s2211_s3 = inlined_call_operand.vmem [shape: f32[2,1,128], index: 3, kind: input, shape index: {}]   ;;  %s2212_s4 = inlined_call_operand.hbm [shape: f32[128,128], index: 4, kind: input, shape index: {}]   ;;  %s2213_s5 = inlined_call_operand.vmem [shape: f32[1,128], index: 5, kind: input, shape index: {}]   ;;  %s2214_s6 = inlined_call_operand.vmem [shape: f32[9,8,128], index: 6, kind: output, shape index: {}]  }
   0x1   :  { %s21_s23 = sshll.u32 %s2210_s2, 4  ;;  %s22_s23 = int_to_ptr.hbm [resolvable:$true] %s21_s23 }
   0x2   :  { %12 = vsyncpa [#allocation7], 0  ;;  %s1457_s24 = smov [#allocation4]   ;;  %s36_s28 = sshll.u32 %s2212_s4, 4  ;;  %s37_s28 = int_to_ptr.hbm [resolvable:$true] %s36_s28 }
   0x3   :  { %s23_s25 = sshll.u32 %s1457_s24, 4  ;;  %s1458_s29 = smov 128   ;;  %s24_s25 = int_to_ptr.vmem [resolvable:$true] %s23_s25 }
   0x4   :  { %s1459_s30 = smov 8   ;;  %s1460_s7 = smov [#allocation6]  }
   0x5   :  { %29 = dma.hbm_to_vmem [thread:$0]  %s22_s23, 4096, %s24_s25, [#allocation5], %s1458_s29, %s1458_s29, %s1459_s30  }
   0x6   :  { %s38_s8 = sshll.u32 %s1460_s7, 4  ;;  %s39_s8 = int_to_ptr.vmem [resolvable:$true] %s38_s8 }
   0x7   :  { %44 = dma.hbm_to_vmem [thread:$0]  %s37_s28, 2048, %s39_s8, [#allocation7], %s1458_s29, %s1458_s29, %s1459_s30  }
   0x8   :  { %1453 = dma.done.wait [#allocation5], 4096  }
   0x9   :  { %1454 = vsyncadd [#allocation5], 4294963200 }
   0xa   :  { %1455 = dma.done.wait [#allocation7], 2048  }
   0xb   :  { %1456 = vsyncadd [#allocation7], 4294965248  ;;  %v85_v0 = vld [vmem:[%s2209_s1 + $0x78] sm:$0xff]  ;;  %v84_v1 = vld [vmem:[%s2209_s1 + $0x70] sm:$0xff]  ;;  %v1461_v33 = vmov 0.0   ;;  %v55_v35 = vlaneseq  ;;  %v1462_v41 = vmov 1.0  }
   0xc   :  { %v1513_v2 = vld [vmem:[#allocation4 + $0x78] sm:$0xff]  ;;  %90 = vmatpush.msra.mxu0 %v85_v0  ;;  %v1516_v3 = vld [vmem:[#allocation4 + $0x70] sm:$0xff]  ;;  %v83_v4 = vld [vmem:[%s2209_s1 + $0x68] sm:$0xff]  ;;  %s1463_s17 = smov 64   ;;  %s1464_s18 = smov 96  }
   0xd   :  { %160 = vmatpush.msra.mxu1 %v1513_v2  ;;  %v1521_v5 = vld [vmem:[#allocation4 + $0x68] sm:$0xff]  ;;  %215 = vmatpush.msra.mxu2 %v1513_v2  ;;  %v82_v6 = vld [vmem:[%s2209_s1 + $0x60] sm:$0xff]  ;;  %v81_v8 = vld [vmem:[%s2209_s1 + $0x58] sm:$0xff]  ;;  %v1709_v39 = vand.u32 127, %v55_v35  ;;  %s1465_s19 = smov 32  }
   0xe   :  { %439 = vmatpush.msra.mxu3 %v1513_v2  ;;  %91 = vmatpush.msra.mxu0 %v84_v1  ;;  %v1529_v7 = vld [vmem:[#allocation4 + $0x60] sm:$0xff]  ;;  %v1537_v9 = vld [vmem:[#allocation4 + $0x58] sm:$0xff]  ;;  %v80_v10 = vld [vmem:[%s2209_s1 + $0x50] sm:$0xff] }
   0xf   :  { %161 = vmatpush.msra.mxu1 %v1516_v3  ;;  %216 = vmatpush.msra.mxu2 %v1516_v3  ;;  %v1545_v11 = vld [vmem:[#allocation4 + $0x50] sm:$0xff]  ;;  %v79_v12 = vld [vmem:[%s2209_s1 + $0x48] sm:$0xff]  ;;  %v78_v14 = vld [vmem:[%s2209_s1 + $0x40] sm:$0xff]  ;;  %vm57_vm0 = vcmp.lt.s32.totalorder %v1709_v39, 96  ;;  %vm60_vm1 = vcmp.lt.s32.totalorder %v1709_v39, 32 }
  0x10   :  { %440 = vmatpush.msra.mxu3 %v1516_v3  ;;  %92 = vmatpush.msra.mxu0 %v83_v4  ;;  %v1553_v13 = vld [vmem:[#allocation4 + $0x48] sm:$0xff]  ;;  %v1561_v15 = vld [vmem:[#allocation4 + $0x40] sm:$0xff]  ;;  %v77_v16 = vld [vmem:[%s2209_s1 + $0x38] sm:$0xff]  ;;  %v1712_v42 = vsel %vm57_vm0, 0.5, %v1462_v41  ;;  %v1715_v44 = vsel %vm57_vm0, 0.5, %v1461_v33 }
  0x11   :  { %162 = vmatpush.msra.mxu1 %v1521_v5  ;;  %217 = vmatpush.msra.mxu2 %v1521_v5  ;;  %v1569_v17 = vld [vmem:[#allocation4 + $0x38] sm:$0xff]  ;;  %v76_v18 = vld [vmem:[%s2209_s1 + $0x30] sm:$0xff]  ;;  %v75_v20 = vld [vmem:[%s2209_s1 + $0x28] sm:$0xff] }
  0x12   :  { %441 = vmatpush.msra.mxu3 %v1521_v5  ;;  %93 = vmatpush.msra.mxu0 %v82_v6  ;;  %v1577_v19 = vld [vmem:[#allocation4 + $0x30] sm:$0xff]  ;;  %v1585_v21 = vld [vmem:[#allocation4 + $0x28] sm:$0xff]  ;;  %v74_v22 = vld [vmem:[%s2209_s1 + $0x20] sm:$0xff] }
  0x13   :  { %163 = vmatpush.msra.mxu1 %v1529_v7  ;;  %218 = vmatpush.msra.mxu2 %v1529_v7  ;;  %v1593_v23 = vld [vmem:[#allocation4 + $0x20] sm:$0xff]  ;;  %v73_v24 = vld [vmem:[%s2209_s1 + $0x18] sm:$0xff]  ;;  %v72_v26 = vld [vmem:[%s2209_s1 + $0x10] sm:$0xff] }
  0x14   :  { %442 = vmatpush.msra.mxu3 %v1529_v7  ;;  %94 = vmatpush.msra.mxu0 %v81_v8  ;;  %v1601_v25 = vld [vmem:[#allocation4 + $0x18] sm:$0xff]  ;;  %v1609_v27 = vld [vmem:[#allocation4 + $0x10] sm:$0xff]  ;;  %v71_v28 = vld [vmem:[%s2209_s1 + $0x8] sm:$0xff] }
  0x15   :  { %164 = vmatpush.msra.mxu1 %v1537_v9  ;;  %219 = vmatpush.msra.mxu2 %v1537_v9  ;;  %v1617_v29 = vld [vmem:[#allocation4 + $0x8] sm:$0xff]  ;;  %v70_v30 = vld [vmem:[%s2209_s1] sm:$0xff]  ;;  %v63_v57 = vld [vmem:[%s2208_s0 + $0x10] sm:$0xff] }
  0x16   :  { %443 = vmatpush.msra.mxu3 %v1537_v9  ;;  %95 = vmatpush.msra.mxu0 %v80_v10  ;;  %v1625_v31 = vld [vmem:[#allocation4] sm:$0xff]  ;;  %v62_v47 = vld [vmem:[%s2208_s0 + $0x8] sm:$0xff]  ;;  %v64_v59 = vld [vmem:[%s2208_s0 + $0x18] sm:$0xff] }
  0x17   :  { %165 = vmatpush.msra.mxu1 %v1545_v11  ;;  %220 = vmatpush.msra.mxu2 %v1545_v11  ;;  %v61_v32 = vld [vmem:[%s2208_s0] sm:$0xff]  ;;  %v67_v4 = vld [vmem:[%s2208_s0 + $0x30] sm:$0xff]  ;;  %v1315_v10 = vld [vmem:[%s2209_s1 + $0xd8] sm:$0xff] }
  0x18   :  { %444 = vmatpush.msra.mxu3 %v1545_v11  ;;  %96 = vmatpush.msra.mxu0 %v79_v12  ;;  %v1706_v34 = vld [vmem:[%s2211_s3] ss:$0 sm:$0xff]  ;;  %v1318_v6 = vld [vmem:[%s2209_s1 + $0xf0] sm:$0xff]  ;;  %v1313_v12 = vld [vmem:[%s2209_s1 + $0xc8] sm:$0xff] }
  0x19   :  { %166 = vmatpush.msra.mxu1 %v1553_v13  ;;  %221 = vmatpush.msra.mxu2 %v1553_v13  ;;  %v65_v63 = vld [vmem:[%s2208_s0 + $0x20] sm:$0xff] }
  0x1a   :  { %445 = vmatpush.msra.mxu3 %v1553_v13  ;;  %97 = vmatpush.msra.mxu0 %v78_v14  ;;  %v1316_v8 = vld [vmem:[%s2209_s1 + $0xe0] sm:$0xff] }
  0x1b   :  { %167 = vmatpush.msra.mxu1 %v1561_v15  ;;  %222 = vmatpush.msra.mxu2 %v1561_v15  ;;  %v69_v14 = vld [vmem:[%s2208_s0 + $0x40] sm:$0xff] }
  0x1c   :  { %446 = vmatpush.msra.mxu3 %v1561_v15  ;;  %98 = vmatpush.msra.mxu0 %v77_v16  ;;  %v1310_v16 = vld [vmem:[%s2209_s1 + $0xb0] sm:$0xff] }
  0x1d   :  { %168 = vmatpush.msra.mxu1 %v1569_v17  ;;  %223 = vmatpush.msra.mxu2 %v1569_v17 }
  0x1e   :  { %447 = vmatpush.msra.mxu3 %v1569_v17  ;;  %99 = vmatpush.msra.mxu0 %v76_v18  ;;  %v1308_v18 = vld [vmem:[%s2209_s1 + $0xa0] sm:$0xff] }
  0x1f   :  { %169 = vmatpush.msra.mxu1 %v1577_v19  ;;  %224 = vmatpush.msra.mxu2 %v1577_v19 }
  0x20   :  { %448 = vmatpush.msra.mxu3 %v1577_v19  ;;  %100 = vmatpush.msra.mxu0 %v75_v20  ;;  %v1306_v20 = vld [vmem:[%s2209_s1 + $0x90] sm:$0xff] }
  0x21   :  { %170 = vmatpush.msra.mxu1 %v1585_v21  ;;  %225 = vmatpush.msra.mxu2 %v1585_v21 }
  0x22   :  { %449 = vmatpush.msra.mxu3 %v1585_v21  ;;  %101 = vmatpush.msra.mxu0 %v74_v22  ;;  %v1304_v22 = vld [vmem:[%s2209_s1 + $0x80] sm:$0xff] }
  0x23   :  { %171 = vmatpush.msra.mxu1 %v1593_v23  ;;  %226 = vmatpush.msra.mxu2 %v1593_v23 }
  0x24   :  { %450 = vmatpush.msra.mxu3 %v1593_v23  ;;  %102 = vmatpush.msra.mxu0 %v73_v24 }
  0x25   :  { %172 = vmatpush.msra.mxu1 %v1601_v25  ;;  %227 = vmatpush.msra.mxu2 %v1601_v25 }
  0x26   :  { %451 = vmatpush.msra.mxu3 %v1601_v25  ;;  %103 = vmatpush.msra.mxu0 %v72_v26 }
  0x27   :  { %173 = vmatpush.msra.mxu1 %v1609_v27  ;;  %228 = vmatpush.msra.mxu2 %v1609_v27 }
  0x28   :  { %452 = vmatpush.msra.mxu3 %v1609_v27  ;;  %104 = vmatpush.msra.mxu0 %v71_v28 }
  0x29   :  { %174 = vmatpush.msra.mxu1 %v1617_v29  ;;  %229 = vmatpush.msra.mxu2 %v1617_v29 }
  0x2a   :  { %453 = vmatpush.msra.mxu3 %v1617_v29  ;;  %105 = vmatpush.msra.mxu0 %v70_v30 }
  0x2b   :  { %175 = vmatpush.msra.mxu1 %v1625_v31  ;;  %106 = vmatmul.f32.vlgmr.msra.gmra.mxu0 %v61_v32 }
  0x2c   :  { %176 = vmatmul.f32.vlgmr.msra.gmra.mxu1 %v1461_v33  ;;  %230 = vmatpush.msra.mxu2 %v1625_v31 }
  0x2d   :  { %271 = vmatpush.msrb.mxu0 %v1513_v2  ;;  %327 = vmatpush.msrb.mxu1 %v1513_v2 }
  0x2e   :  { %383 = vmatpush.msrb.mxu2 %v1513_v2  ;;  %454 = vmatpush.msra.mxu3 %v1625_v31 }
  0x2f   :  { %272 = vmatpush.msrb.mxu0 %v1516_v3  ;;  %328 = vmatpush.msrb.mxu1 %v1516_v3 }
  0x30   :  { %384 = vmatpush.msrb.mxu2 %v1516_v3 }
  0x31   :  { %273 = vmatpush.msrb.mxu0 %v1521_v5  ;;  %329 = vmatpush.msrb.mxu1 %v1521_v5 }
  0x32   :  { %385 = vmatpush.msrb.mxu2 %v1521_v5 }
  0x33   :  { %274 = vmatpush.msrb.mxu0 %v1529_v7  ;;  %330 = vmatpush.msrb.mxu1 %v1529_v7 }
  0x34   :  { %386 = vmatpush.msrb.mxu2 %v1529_v7  ;;  %109 = vmatmul.f32.gmra.mxu0 %v62_v47 }
  0x35   :  { %275 = vmatpush.msrb.mxu0 %v1537_v9  ;;  %331 = vmatpush.msrb.mxu1 %v1537_v9 }
  0x36   :  { %387 = vmatpush.msrb.mxu2 %v1537_v9 }
  0x37   :  { %276 = vmatpush.msrb.mxu0 %v1545_v11  ;;  %332 = vmatpush.msrb.mxu1 %v1545_v11 }
  0x38   :  { %388 = vmatpush.msrb.mxu2 %v1545_v11 }
  0x39   :  { %277 = vmatpush.msrb.mxu0 %v1553_v13  ;;  %333 = vmatpush.msrb.mxu1 %v1553_v13 }
  0x3a   :  { %389 = vmatpush.msrb.mxu2 %v1553_v13 }
  0x3b   :  { %278 = vmatpush.msrb.mxu0 %v1561_v15  ;;  %334 = vmatpush.msrb.mxu1 %v1561_v15 }
  0x3c   :  { %390 = vmatpush.msrb.mxu2 %v1561_v15  ;;  %112 = vmatmul.f32.gmra.mxu0 %v63_v57 }
  0x3d   :  { %279 = vmatpush.msrb.mxu0 %v1569_v17  ;;  %335 = vmatpush.msrb.mxu1 %v1569_v17 }
  0x3e   :  { %391 = vmatpush.msrb.mxu2 %v1569_v17 }
  0x3f   :  { %280 = vmatpush.msrb.mxu0 %v1577_v19  ;;  %336 = vmatpush.msrb.mxu1 %v1577_v19 }
  0x40   :  { %392 = vmatpush.msrb.mxu2 %v1577_v19 }
  0x41   :  { %281 = vmatpush.msrb.mxu0 %v1585_v21  ;;  %337 = vmatpush.msrb.mxu1 %v1585_v21 }
  0x42   :  { %393 = vmatpush.msrb.mxu2 %v1585_v21 }
  0x43   :  { %282 = vmatpush.msrb.mxu0 %v1593_v23  ;;  %338 = vmatpush.msrb.mxu1 %v1593_v23 }
  0x44   :  { %394 = vmatpush.msrb.mxu2 %v1593_v23  ;;  %115 = vmatmul.f32.gmra.mxu0 %v64_v59 }
  0x45   :  { %283 = vmatpush.msrb.mxu0 %v1601_v25  ;;  %339 = vmatpush.msrb.mxu1 %v1601_v25 }
  0x46   :  { %395 = vmatpush.msrb.mxu2 %v1601_v25 }
  0x47   :  { %284 = vmatpush.msrb.mxu0 %v1609_v27  ;;  %340 = vmatpush.msrb.mxu1 %v1609_v27 }
  0x48   :  { %396 = vmatpush.msrb.mxu2 %v1609_v27 }
  0x49   :  { %285 = vmatpush.msrb.mxu0 %v1617_v29  ;;  %341 = vmatpush.msrb.mxu1 %v1617_v29 }
  0x4a   :  { %397 = vmatpush.msrb.mxu2 %v1617_v29 }
  0x4b   :  { %286 = vmatpush.msrb.mxu0 %v1625_v31  ;;  %342 = vmatpush.msrb.mxu1 %v1625_v31 }
  0x4c   :  { %398 = vmatpush.msrb.mxu2 %v1625_v31  ;;  %118 = vmatmul.f32.gmra.mxu0 %v65_v63 }
  0x4d   :  { %495 = vmatpush.msra.mxu1 %v1513_v2 }
  0x4f   :  { %496 = vmatpush.msra.mxu1 %v1516_v3 }
  0x51   :  { %497 = vmatpush.msra.mxu1 %v1521_v5 }
  0x53   :  { %498 = vmatpush.msra.mxu1 %v1529_v7 }
  0x55   :  { %499 = vmatpush.msra.mxu1 %v1537_v9 }
  0x57   :  { %500 = vmatpush.msra.mxu1 %v1545_v11 }
  0x59   :  { %501 = vmatpush.msra.mxu1 %v1553_v13 }
  0x5b   :  { %502 = vmatpush.msra.mxu1 %v1561_v15 }
  0x5d   :  { %503 = vmatpush.msra.mxu1 %v1569_v17 }
  0x5f   :  { %504 = vmatpush.msra.mxu1 %v1577_v19 }
  0x61   :  { %505 = vmatpush.msra.mxu1 %v1585_v21 }
  0x63   :  { %506 = vmatpush.msra.mxu1 %v1593_v23 }
  0x65   :  { %507 = vmatpush.msra.mxu1 %v1601_v25 }
  0x67   :  { %508 = vmatpush.msra.mxu1 %v1609_v27 }
  0x69   :  { %509 = vmatpush.msra.mxu1 %v1617_v29 }
  0x6b   :  { %510 = vmatpush.msra.mxu1 %v1625_v31 }
  0xa8   :  { %v107_v36 = vpop.f32.mrf.mxu0 }
  0xa9   :  { %v177_v37 = vpop.f32.mrf.mxu1  ;;  %v108_v38 = vadd.f32 %v1706_v34, %v107_v36 }
  0xab   :  { %v180_v40 = vadd.f32 %v177_v37, %v108_v38 }
  0xad   :  { %1333 = vtanh.f32 %v180_v40 }
  0xb1   :  { %v110_v58 = vpop.f32.mrf.mxu0 }
  0xb2   :  { %v111_v60 = vadd.f32 %v1706_v34, %v110_v58 }
  0xb3   :  { %v1334_v43 = vpop.eup %1333 }
  0xb4   :  { %v182_v45 = vmul.f32 %v1334_v43, %v1712_v42 }
  0xb6   :  { %v183_v46 = vadd.f32 %v182_v45, %v1715_v44 }
  0xb8   :  { %186 = vrot.lane.b32.xlu1 %v183_v46, %s1463_s17  ;;  %184 = vrot.lane.b32.xlu0 %v183_v46, %s1464_s18  ;;  %v190_v50 = vmul.f32 0.0, %v183_v46 }
  0xb9   :  { %v113_v32 = vpop.f32.mrf.mxu0 }
  0xba   :  { %v114_v43 = vadd.f32 %v1706_v34, %v113_v32  ;;  %v1878_v32 = vld [vmem:[#allocation4 + $0xf0] sm:$0xff] }
  0xc0   :  { %188 = vrot.lane.b32.xlu0 %v183_v46, %s1465_s19 }
  0xc1   :  { %v116_v35 = vpop.f32.mrf.mxu0 }
  0xc2   :  { %v117_v59 = vadd.f32 %v1706_v34, %v116_v35  ;;  %v1882_v35 = vld [vmem:[#allocation4 + $0xe8] sm:$0xff] }
  0xc9   :  { %v119_v36 = vpop.f32.mrf.mxu0 }
 0x12a   :  { %v185_v48 = vpop.permute.xlu0 %184  ;;  %v187_v55 = vpop.permute.xlu1 %186 }
 0x132   :  { %v189_v49 = vpop.permute.xlu0 %188 }
 0x133   :  { %v191_v51 = vmul.f32 %v189_v49, %v185_v48 }
 0x135   :  { %v192_v52 = vadd.f32 %v191_v51, %v190_v50 }
 0x137   :  { %v1728_v53 = vsel %vm60_vm1, %v192_v52, 0.0 }
 0x138   :  { %1335 = vtanh.f32 %v1728_v53 }
 0x13e   :  { %v1336_v54 = vpop.eup %1335 }
 0x13f   :  { %v1731_v56 = vmul.f32 %v1336_v54, %v187_v55 }
 0x141   :  { %231 = vmatmul.f32.vlgmr.msra.gmra.mxu2 %v1731_v56 }
 0x142   :  { %551 = vmatpush.msra.mxu2 %v1513_v2 }
 0x144   :  { %552 = vmatpush.msra.mxu2 %v1516_v3  ;;  %v66_v3 = vld [vmem:[%s2208_s0 + $0x28] sm:$0xff] }
 0x145   :  { %121 = vmatmul.f32.gmra.mxu0 %v66_v3 }
 0x146   :  { %553 = vmatpush.msra.mxu2 %v1521_v5  ;;  %v1319_v5 = vld [vmem:[%s2209_s1 + $0xf8] sm:$0xff] }
 0x147   :  { %676 = vmatpush.msra.mxu0 %v1319_v5 }
 0x148   :  { %554 = vmatpush.msra.mxu2 %v1529_v7  ;;  %v1317_v7 = vld [vmem:[%s2209_s1 + $0xe8] sm:$0xff] }
 0x149   :  { %677 = vmatpush.msra.mxu0 %v1318_v6 }
 0x14a   :  { %555 = vmatpush.msra.mxu2 %v1537_v9  ;;  %v68_v9 = vld [vmem:[%s2208_s0 + $0x38] sm:$0xff] }
 0x14b   :  { %678 = vmatpush.msra.mxu0 %v1317_v7 }
 0x14c   :  { %556 = vmatpush.msra.mxu2 %v1545_v11  ;;  %v1314_v11 = vld [vmem:[%s2209_s1 + $0xd0] sm:$0xff] }
 0x14d   :  { %124 = vmatmul.f32.gmra.mxu0 %v67_v4 }
 0x14e   :  { %557 = vmatpush.msra.mxu2 %v1553_v13  ;;  %679 = vmatpush.msra.mxu0 %v1316_v8  ;;  %v1312_v13 = vld [vmem:[%s2209_s1 + $0xc0] sm:$0xff] }
 0x150   :  { %558 = vmatpush.msra.mxu2 %v1561_v15  ;;  %680 = vmatpush.msra.mxu0 %v1315_v10  ;;  %v1311_v15 = vld [vmem:[%s2209_s1 + $0xb8] sm:$0xff]  ;;  %v120_v10 = vadd.f32 %v1706_v34, %v119_v36  ;;  %v1887_v36 = vld [vmem:[#allocation4 + $0xe0] sm:$0xff] }
 0x152   :  { %559 = vmatpush.msra.mxu2 %v1569_v17  ;;  %681 = vmatpush.msra.mxu0 %v1314_v11  ;;  %v1309_v17 = vld [vmem:[%s2209_s1 + $0xa8] sm:$0xff] }
 0x154   :  { %560 = vmatpush.msra.mxu2 %v1577_v19  ;;  %682 = vmatpush.msra.mxu0 %v1313_v12  ;;  %v1307_v19 = vld [vmem:[%s2209_s1 + $0x98] sm:$0xff] }
 0x155   :  { %127 = vmatmul.f32.gmra.mxu0 %v68_v9 }
 0x156   :  { %561 = vmatpush.msra.mxu2 %v1585_v21  ;;  %683 = vmatpush.msra.mxu0 %v1312_v13  ;;  %v1305_v21 = vld [vmem:[%s2209_s1 + $0x88] sm:$0xff] }
 0x158   :  { %562 = vmatpush.msra.mxu2 %v1593_v23  ;;  %684 = vmatpush.msra.mxu0 %v1311_v15 }
 0x15a   :  { %563 = vmatpush.msra.mxu2 %v1601_v25  ;;  %685 = vmatpush.msra.mxu0 %v1310_v16 }
 0x15c   :  { %564 = vmatpush.msra.mxu2 %v1609_v27  ;;  %686 = vmatpush.msra.mxu0 %v1309_v17 }
 0x15d   :  { %130 = vmatmul.f32.gmra.mxu0 %v69_v14 }
 0x15e   :  { %565 = vmatpush.msra.mxu2 %v1617_v29  ;;  %687 = vmatpush.msra.mxu0 %v1308_v18 }
 0x160   :  { %566 = vmatpush.msra.mxu2 %v1625_v31  ;;  %688 = vmatpush.msra.mxu0 %v1307_v19 }
 0x162   :  { %689 = vmatpush.msra.mxu0 %v1306_v20 }
 0x164   :  { %690 = vmatpush.msra.mxu0 %v1305_v21 }
 0x166   :  { %691 = vmatpush.msra.mxu0 %v1304_v22 }
 0x1c2   :  { %v1829_v37 = vpop.f32.mrf.mxu0 }
 0x1c4   :  { %v232_v61 = vpop.f32.mrf.mxu2 }
 0x1c5   :  { %v235_v62 = vadd.f32 %v232_v61, %v111_v60 }
 0x1c7   :  { %1337 = vtanh.f32 %v235_v62 }
 0x1ca   :  { %v1831_v38 = vpop.f32.mrf.mxu0 }
 0x1cd   :  { %v1338_v0 = vpop.eup %1337 }
 0x1ce   :  { %v237_v1 = vmul.f32 %v1338_v0, %v1712_v42 }
 0x1d0   :  { %v238_v2 = vadd.f32 %v237_v1, %v1715_v44 }
 0x1d2   :  { %243 = vrot.lane.b32.xlu2 %v238_v2, %s1465_s19  ;;  %239 = vrot.lane.b32.xlu1 %v238_v2, %s1464_s18  ;;  %v245_v25 = vmul.f32 %v238_v2, %v1728_v53  ;;  %v1833_v40 = vpop.f32.mrf.mxu0 }
 0x1da   :  { %241 = vrot.lane.b32.xlu2 %v238_v2, %s1463_s17  ;;  %v1835_v41 = vpop.f32.mrf.mxu0 }
 0x22c   :  { %v244_v23 = vpop.permute.xlu2 %243 }
 0x234   :  { %v242_v30 = vpop.permute.xlu2 %241 }
 0x244   :  { %v240_v24 = vpop.permute.xlu1 %239 }
 0x245   :  { %v246_v26 = vmul.f32 %v244_v23, %v240_v24 }
 0x247   :  { %v247_v27 = vadd.f32 %v246_v26, %v245_v25  ;;  %v123_v25 = vadd.f32 %v1706_v34, %v1829_v37  ;;  %v1892_v37 = vld [vmem:[#allocation4 + $0xd8] sm:$0xff] }
 0x249   :  { %v248_v28 = vsel %vm60_vm1, %v247_v27, 0.0 }
 0x24a   :  { %1339 = vtanh.f32 %v248_v28 }
 0x250   :  { %v1340_v29 = vpop.eup %1339 }
 0x251   :  { %v250_v31 = vmul.f32 %v1340_v29, %v242_v30 }
 0x253   :  { %287 = vmatmul.f32.vlgmr.msrb.gmra.mxu0 %v250_v31 }
 0x25b   :  { %692 = vmatmul.f32.vlgmr.msra.gmra.mxu0 %v1731_v56 }
 0x263   :  { %695 = vmatmul.f32.gmra.mxu0 %v250_v31  ;;  %v1876_v31 = vld [vmem:[#allocation4 + $0xf8] sm:$0xff] }
 0x264   :  { %1071 = vmatpush.msrb.mxu0 %v1876_v31 }
 0x266   :  { %1072 = vmatpush.msrb.mxu0 %v1878_v32 }
 0x268   :  { %1073 = vmatpush.msrb.mxu0 %v1882_v35 }
 0x26a   :  { %1074 = vmatpush.msrb.mxu0 %v1887_v36 }
 0x26c   :  { %1075 = vmatpush.msrb.mxu0 %v1892_v37 }
 0x2d0   :  { %v288_v45 = vpop.f32.mrf.mxu0 }
 0x2d1   :  { %v291_v46 = vadd.f32 %v288_v45, %v114_v43  ;;  %v1901_v43 = vld [vmem:[#allocation4 + $0xd0] sm:$0xff]  ;;  %v1905_v45 = vld [vmem:[#allocation4 + $0xc8] sm:$0xff] }
 0x2d2   :  { %1076 = vmatpush.msrb.mxu0 %v1901_v43 }
 0x2d3   :  { %1341 = vtanh.f32 %v291_v46  ;;  %v1910_v46 = vld [vmem:[#allocation4 + $0xc0] sm:$0xff] }
 0x2d4   :  { %1077 = vmatpush.msrb.mxu0 %v1905_v45 }
 0x2d6   :  { %1078 = vmatpush.msrb.mxu0 %v1910_v46 }
 0x2d9   :  { %v1342_v47 = vpop.eup %1341 }
 0x2da   :  { %v293_v48 = vmul.f32 %v1342_v47, %v1712_v42  ;;  %v1914_v47 = vld [vmem:[#allocation4 + $0xb8] sm:$0xff] }
 0x2db   :  { %1079 = vmatpush.msrb.mxu0 %v1914_v47 }
 0x2dc   :  { %v294_v49 = vadd.f32 %v293_v48, %v1715_v44  ;;  %v1917_v48 = vld [vmem:[#allocation4 + $0xb0] sm:$0xff] }
 0x2dd   :  { %1080 = vmatpush.msrb.mxu0 %v1917_v48 }
 0x2de   :  { %297 = vrot.lane.b32.xlu2 %v294_v49, %s1463_s17  ;;  %299 = vrot.lane.b32.xlu1 %v294_v49, %s1465_s19  ;;  %v301_v52 = vmul.f32 %v294_v49, %v248_v28 }
 0x2df   :  { %295 = vrot.lane.b32.xlu0 %v294_v49, %s1464_s18  ;;  %v1922_v49 = vld [vmem:[#allocation4 + $0xa8] sm:$0xff] }
 0x2e0   :  { %1081 = vmatpush.msrb.mxu0 %v1922_v49 }
 0x338   :  { %v298_v57 = vpop.permute.xlu2 %297 }
 0x350   :  { %v300_v50 = vpop.permute.xlu1 %299 }
 0x351   :  { %v296_v51 = vpop.permute.xlu0 %295 }
 0x352   :  { %v302_v53 = vmul.f32 %v300_v50, %v296_v51  ;;  %v1927_v50 = vld [vmem:[#allocation4 + $0xa0] sm:$0xff]  ;;  %v1935_v51 = vld [vmem:[#allocation4 + $0x98] sm:$0xff] }
 0x353   :  { %1082 = vmatpush.msrb.mxu0 %v1927_v50 }
 0x354   :  { %v303_v54 = vadd.f32 %v302_v53, %v301_v52  ;;  %v1937_v52 = vld [vmem:[#allocation4 + $0x90] sm:$0xff]  ;;  %v1942_v53 = vld [vmem:[#allocation4 + $0x88] sm:$0xff] }
 0x355   :  { %1083 = vmatpush.msrb.mxu0 %v1935_v51 }
 0x356   :  { %v304_v55 = vsel %vm60_vm1, %v303_v54, 0.0  ;;  %v1947_v54 = vld [vmem:[#allocation4 + $0x80] sm:$0xff] }
 0x357   :  { %1343 = vtanh.f32 %v304_v55  ;;  %1084 = vmatpush.msrb.mxu0 %v1937_v52 }
 0x359   :  { %1085 = vmatpush.msrb.mxu0 %v1942_v53 }
 0x35b   :  { %1086 = vmatpush.msrb.mxu0 %v1947_v54 }
 0x35d   :  { %v1344_v56 = vpop.eup %1343 }
 0x35e   :  { %v306_v58 = vmul.f32 %v1344_v56, %v298_v57 }
 0x360   :  { %343 = vmatmul.f32.vlgmr.msrb.gmra.mxu1 %v306_v58  ;;  %698 = vmatmul.f32.gmra.mxu0 %v306_v58 }
 0x361   :  { %747 = vmatpush.msrb.mxu1 %v1876_v31 }
 0x363   :  { %748 = vmatpush.msrb.mxu1 %v1878_v32 }
 0x365   :  { %749 = vmatpush.msrb.mxu1 %v1882_v35 }
 0x367   :  { %750 = vmatpush.msrb.mxu1 %v1887_v36 }
 0x369   :  { %751 = vmatpush.msrb.mxu1 %v1892_v37 }
 0x36b   :  { %752 = vmatpush.msrb.mxu1 %v1901_v43 }
 0x36d   :  { %753 = vmatpush.msrb.mxu1 %v1905_v45 }
 0x36f   :  { %754 = vmatpush.msrb.mxu1 %v1910_v46 }
 0x371   :  { %755 = vmatpush.msrb.mxu1 %v1914_v47 }
 0x373   :  { %756 = vmatpush.msrb.mxu1 %v1917_v48 }
 0x375   :  { %757 = vmatpush.msrb.mxu1 %v1922_v49 }
 0x377   :  { %758 = vmatpush.msrb.mxu1 %v1927_v50 }
 0x379   :  { %759 = vmatpush.msrb.mxu1 %v1935_v51 }
 0x37b   :  { %760 = vmatpush.msrb.mxu1 %v1937_v52 }
 0x37d   :  { %761 = vmatpush.msrb.mxu1 %v1942_v53 }
 0x37f   :  { %762 = vmatpush.msrb.mxu1 %v1947_v54 }
 0x3dd   :  { %v344_v60 = vpop.f32.mrf.mxu1 }
 0x3de   :  { %v347_v61 = vadd.f32 %v344_v60, %v117_v59 }
 0x3e0   :  { %1345 = vtanh.f32 %v347_v61 }
 0x3e6   :  { %v1346_v62 = vpop.eup %1345 }
 0x3e7   :  { %v349_v63 = vmul.f32 %v1346_v62, %v1712_v42 }
 0x3e9   :  { %v350_v0 = vadd.f32 %v349_v63, %v1715_v44 }
 0x3eb   :  { %353 = vrot.lane.b32.xlu2 %v350_v0, %s1463_s17  ;;  %355 = vrot.lane.b32.xlu1 %v350_v0, %s1465_s19  ;;  %v357_v3 = vmul.f32 %v350_v0, %v304_v55 }
 0x3ec   :  { %351 = vrot.lane.b32.xlu0 %v350_v0, %s1464_s18 }
 0x445   :  { %v354_v8 = vpop.permute.xlu2 %353 }
 0x45d   :  { %v356_v1 = vpop.permute.xlu1 %355 }
 0x45e   :  { %v352_v2 = vpop.permute.xlu0 %351 }
 0x45f   :  { %v358_v4 = vmul.f32 %v356_v1, %v352_v2  ;;  %v1982_v2 = vld [vmem:[%s2211_s3 + $0x1] ss:$0 sm:$0xff] }
 0x461   :  { %v359_v5 = vadd.f32 %v358_v4, %v357_v3  ;;  %v693_v3 = vpop.f32.mrf.mxu0 }
 0x462   :  { %v694_v4 = vadd.f32 %v1982_v2, %v693_v3 }
 0x463   :  { %v360_v6 = vsel %vm60_vm1, %v359_v5, 0.0 }
 0x464   :  { %1347 = vtanh.f32 %v360_v6 }
 0x46a   :  { %v1348_v7 = vpop.eup %1347 }
 0x46b   :  { %v362_v9 = vmul.f32 %v1348_v7, %v354_v8 }
 0x46d   :  { %399 = vmatmul.f32.vlgmr.msrb.gmra.mxu2 %v362_v9  ;;  %701 = vmatmul.f32.gmra.mxu0 %v362_v9 }
 0x46e   :  { %801 = vmatpush.msrb.mxu2 %v1876_v31 }
 0x470   :  { %802 = vmatpush.msrb.mxu2 %v1878_v32 }
 0x472   :  { %803 = vmatpush.msrb.mxu2 %v1882_v35 }
 0x474   :  { %804 = vmatpush.msrb.mxu2 %v1887_v36 }
 0x476   :  { %805 = vmatpush.msrb.mxu2 %v1892_v37 }
 0x478   :  { %806 = vmatpush.msrb.mxu2 %v1901_v43 }
 0x47a   :  { %807 = vmatpush.msrb.mxu2 %v1905_v45 }
 0x47c   :  { %808 = vmatpush.msrb.mxu2 %v1910_v46 }
 0x47e   :  { %809 = vmatpush.msrb.mxu2 %v1914_v47 }
 0x480   :  { %810 = vmatpush.msrb.mxu2 %v1917_v48 }
 0x482   :  { %811 = vmatpush.msrb.mxu2 %v1922_v49 }
 0x484   :  { %812 = vmatpush.msrb.mxu2 %v1927_v50 }
 0x486   :  { %813 = vmatpush.msrb.mxu2 %v1935_v51 }
 0x488   :  { %814 = vmatpush.msrb.mxu2 %v1937_v52 }
 0x48a   :  { %815 = vmatpush.msrb.mxu2 %v1942_v53 }
 0x48c   :  { %816 = vmatpush.msrb.mxu2 %v1947_v54 }
 0x4f0   :  { %v400_v11 = vpop.f32.mrf.mxu2 }
 0x4f1   :  { %v403_v12 = vadd.f32 %v400_v11, %v120_v10 }
 0x4f3   :  { %1349 = vtanh.f32 %v403_v12 }
 0x4f9   :  { %v1350_v13 = vpop.eup %1349 }
 0x4fa   :  { %v405_v14 = vmul.f32 %v1350_v13, %v1712_v42 }
 0x4fc   :  { %v406_v15 = vadd.f32 %v405_v14, %v1715_v44 }
 0x4fe   :  { %409 = vrot.lane.b32.xlu2 %v406_v15, %s1463_s17  ;;  %411 = vrot.lane.b32.xlu1 %v406_v15, %s1465_s19  ;;  %v413_v18 = vmul.f32 %v406_v15, %v360_v6 }
 0x4ff   :  { %407 = vrot.lane.b32.xlu0 %v406_v15, %s1464_s18 }
 0x558   :  { %v410_v23 = vpop.permute.xlu2 %409 }
 0x570   :  { %v412_v16 = vpop.permute.xlu1 %411 }
 0x571   :  { %v408_v17 = vpop.permute.xlu0 %407 }
 0x572   :  { %v414_v19 = vmul.f32 %v412_v16, %v408_v17 }
 0x574   :  { %v415_v20 = vadd.f32 %v414_v19, %v413_v18 }
 0x576   :  { %v1861_v21 = vsel %vm60_vm1, %v415_v20, 0.0 }
 0x577   :  { %1351 = vtanh.f32 %v1861_v21 }
 0x57d   :  { %v1352_v22 = vpop.eup %1351 }
 0x57e   :  { %v418_v24 = vmul.f32 %v1352_v22, %v410_v23 }
 0x580   :  { %455 = vmatmul.f32.vlgmr.msra.gmra.mxu3 %v418_v24  ;;  %704 = vmatmul.f32.gmra.mxu0 %v418_v24 }
 0x603   :  { %v456_v26 = vpop.f32.mrf.mxu3 }
 0x604   :  { %v459_v27 = vadd.f32 %v456_v26, %v123_v25 }
 0x606   :  { %1353 = vtanh.f32 %v459_v27 }
 0x60c   :  { %v1354_v28 = vpop.eup %1353 }
 0x60d   :  { %v461_v29 = vmul.f32 %v1354_v28, %v1712_v42 }
 0x60f   :  { %v1868_v30 = vadd.f32 %v461_v29, %v1715_v44 }
 0x611   :  { %465 = vrot.lane.b32.xlu2 %v1868_v30, %s1463_s17  ;;  %467 = vrot.lane.b32.xlu1 %v1868_v30, %s1465_s19  ;;  %v469_v57 = vmul.f32 %v1868_v30, %v1861_v21 }
 0x612   :  { %463 = vrot.lane.b32.xlu0 %v1868_v30, %s1464_s18  ;;  %v129_v30 = vadd.f32 %v1706_v34, %v1833_v40  ;;  %v600_v40 = vld [vmem:[#allocation4 + $0x48] sm:$0xff] }
 0x66b   :  { %v466_v62 = vpop.permute.xlu2 %465 }
 0x683   :  { %v468_v55 = vpop.permute.xlu1 %467 }
 0x684   :  { %v464_v56 = vpop.permute.xlu0 %463 }
 0x685   :  { %v470_v58 = vmul.f32 %v468_v55, %v464_v56  ;;  %v606_v55 = vld [vmem:[#allocation4 + $0x78] sm:$0xff]  ;;  %v605_v56 = vld [vmem:[#allocation4 + $0x70] sm:$0xff] }
 0x686   :  { %607 = vmatpush.msrb.mxu3 %v606_v55 }
 0x687   :  { %v471_v59 = vadd.f32 %v470_v58, %v469_v57 }
 0x688   :  { %608 = vmatpush.msrb.mxu3 %v605_v56 }
 0x689   :  { %v472_v60 = vsel %vm60_vm1, %v471_v59, 0.0  ;;  %v604_v59 = vld [vmem:[#allocation4 + $0x68] sm:$0xff] }
 0x68a   :  { %1355 = vtanh.f32 %v472_v60  ;;  %609 = vmatpush.msrb.mxu3 %v604_v59 }
 0x690   :  { %v1356_v61 = vpop.eup %1355 }
 0x691   :  { %v474_v63 = vmul.f32 %v1356_v61, %v466_v62  ;;  %v696_v61 = vpop.f32.mrf.mxu0  ;;  %v602_v62 = vld [vmem:[#allocation4 + $0x58] sm:$0xff] }
 0x693   :  { %511 = vmatmul.f32.vlgmr.msra.gmra.mxu1 %v474_v63  ;;  %707 = vmatmul.f32.gmra.mxu0 %v474_v63  ;;  %v601_v63 = vld [vmem:[#allocation4 + $0x50] sm:$0xff] }
 0x694   :  { %909 = vmatpush.msra.mxu1 %v1876_v31 }
 0x696   :  { %910 = vmatpush.msra.mxu1 %v1878_v32 }
 0x698   :  { %911 = vmatpush.msra.mxu1 %v1882_v35 }
 0x69a   :  { %912 = vmatpush.msra.mxu1 %v1887_v36 }
 0x69b   :  { %763 = vmatmul.f32.vlgmr.msrb.gmra.mxu1 %v1461_v33  ;;  %v126_v33 = vadd.f32 %v1706_v34, %v1831_v38 }
 0x69c   :  { %913 = vmatpush.msra.mxu1 %v1892_v37 }
 0x69e   :  { %914 = vmatpush.msra.mxu1 %v1901_v43 }
 0x6a0   :  { %915 = vmatpush.msra.mxu1 %v1905_v45 }
 0x6a2   :  { %916 = vmatpush.msra.mxu1 %v1910_v46 }
 0x6a4   :  { %917 = vmatpush.msra.mxu1 %v1914_v47 }
 0x6a6   :  { %918 = vmatpush.msra.mxu1 %v1917_v48 }
 0x6a8   :  { %919 = vmatpush.msra.mxu1 %v1922_v49 }
 0x6aa   :  { %920 = vmatpush.msra.mxu1 %v1927_v50 }
 0x6ac   :  { %921 = vmatpush.msra.mxu1 %v1935_v51 }
 0x6ae   :  { %922 = vmatpush.msra.mxu1 %v1937_v52 }
 0x6b0   :  { %923 = vmatpush.msra.mxu1 %v1942_v53 }
 0x6b2   :  { %924 = vmatpush.msra.mxu1 %v1947_v54 }
 0x710   :  { %v512_v0 = vpop.f32.mrf.mxu1 }
 0x711   :  { %v515_v1 = vadd.f32 %v512_v0, %v126_v33  ;;  %v697_v33 = vadd.f32 %v1982_v2, %v696_v61 }
 0x713   :  { %1357 = vtanh.f32 %v515_v1 }
 0x718   :  { %v764_v5 = vpop.f32.mrf.mxu1 }
 0x719   :  { %v1358_v6 = vpop.eup %1357  ;;  %v767_v7 = vadd.f32 %v764_v5, %v694_v4 }
 0x71a   :  { %v517_v8 = vmul.f32 %v1358_v6, %v1712_v42  ;;  %v599_v6 = vld [vmem:[#allocation4 + $0x40] sm:$0xff] }
 0x71b   :  { %1359 = vtanh.f32 %v767_v7  ;;  %v598_v7 = vld [vmem:[#allocation4 + $0x38] sm:$0xff] }
 0x71c   :  { %v518_v9 = vadd.f32 %v517_v8, %v1715_v44  ;;  %v597_v8 = vld [vmem:[#allocation4 + $0x30] sm:$0xff] }
 0x71e   :  { %523 = vrot.lane.b32.xlu1 %v518_v9, %s1465_s19  ;;  %519 = vrot.lane.b32.xlu0 %v518_v9, %s1464_s18  ;;  %v525_v14 = vmul.f32 %v518_v9, %v472_v60  ;;  %v603_v60 = vld [vmem:[#allocation4 + $0x60] sm:$0xff] }
 0x71f   :  { %610 = vmatpush.msrb.mxu3 %v603_v60 }
 0x721   :  { %v1360_v38 = vpop.eup %1359  ;;  %611 = vmatpush.msrb.mxu3 %v602_v62 }
 0x722   :  { %v769_v10 = vmul.f32 %v1360_v38, %v1712_v42  ;;  %v596_v38 = vld [vmem:[#allocation4 + $0x28] sm:$0xff] }
 0x723   :  { %612 = vmatpush.msrb.mxu3 %v601_v63 }
 0x724   :  { %v770_v11 = vadd.f32 %v769_v10, %v1715_v44 }
 0x725   :  { %613 = vmatpush.msrb.mxu3 %v600_v40 }
 0x726   :  { %771 = vrot.lane.b32.xlu2 %v770_v11, %s1464_s18  ;;  %521 = vrot.lane.b32.xlu1 %v518_v9, %s1463_s17  ;;  %v777_v20 = vmul.f32 0.0, %v770_v11 }
 0x727   :  { %775 = vrot.lane.b32.xlu0 %v770_v11, %s1465_s19  ;;  %614 = vmatpush.msrb.mxu3 %v599_v6 }
 0x729   :  { %615 = vmatpush.msrb.mxu3 %v598_v7 }
 0x72b   :  { %616 = vmatpush.msrb.mxu3 %v597_v8 }
 0x72d   :  { %617 = vmatpush.msrb.mxu3 %v596_v38 }
 0x72e   :  { %773 = vrot.lane.b32.xlu2 %v770_v11, %s1463_s17 }
 0x780   :  { %v772_v18 = vpop.permute.xlu2 %771 }
 0x788   :  { %v774_v28 = vpop.permute.xlu2 %773 }
 0x790   :  { %v524_v12 = vpop.permute.xlu1 %523  ;;  %v520_v13 = vpop.permute.xlu0 %519 }
 0x791   :  { %v526_v15 = vmul.f32 %v524_v12, %v520_v13  ;;  %v595_v12 = vld [vmem:[#allocation4 + $0x20] sm:$0xff]  ;;  %v594_v13 = vld [vmem:[#allocation4 + $0x18] sm:$0xff] }
 0x792   :  { %618 = vmatpush.msrb.mxu3 %v595_v12 }
 0x793   :  { %v527_v16 = vadd.f32 %v526_v15, %v525_v14  ;;  %v593_v14 = vld [vmem:[#allocation4 + $0x10] sm:$0xff]  ;;  %v592_v15 = vld [vmem:[#allocation4 + $0x8] sm:$0xff] }
 0x794   :  { %619 = vmatpush.msrb.mxu3 %v594_v13 }
 0x795   :  { %v1997_v17 = vsel %vm60_vm1, %v527_v16, 0.0  ;;  %v591_v16 = vld [vmem:[#allocation4] sm:$0xff] }
 0x796   :  { %1361 = vtanh.f32 %v1997_v17  ;;  %620 = vmatpush.msrb.mxu3 %v593_v14 }
 0x798   :  { %v522_v23 = vpop.permute.xlu1 %521  ;;  %621 = vmatpush.msrb.mxu3 %v592_v15 }
 0x799   :  { %v776_v19 = vpop.permute.xlu0 %775 }
 0x79a   :  { %v778_v21 = vmul.f32 %v776_v19, %v772_v18  ;;  %622 = vmatpush.msrb.mxu3 %v591_v16 }
 0x79c   :  { %v1362_v22 = vpop.eup %1361  ;;  %v779_v24 = vadd.f32 %v778_v21, %v777_v20  ;;  %855 = vmatpush.msra.mxu3 %v1876_v31 }
 0x79d   :  { %v530_v25 = vmul.f32 %v1362_v22, %v522_v23 }
 0x79e   :  { %v2002_v26 = vsel %vm60_vm1, %v779_v24, 0.0  ;;  %856 = vmatpush.msra.mxu3 %v1878_v32 }
 0x79f   :  { %1363 = vtanh.f32 %v2002_v26  ;;  %567 = vmatmul.f32.vlgmr.msra.gmra.mxu2 %v530_v25  ;;  %710 = vmatmul.f32.gmra.mxu0 %v530_v25 }
 0x7a0   :  { %963 = vmatpush.msra.mxu2 %v1876_v31  ;;  %857 = vmatpush.msra.mxu3 %v1882_v35 }
 0x7a2   :  { %964 = vmatpush.msra.mxu2 %v1878_v32  ;;  %858 = vmatpush.msra.mxu3 %v1887_v36 }
 0x7a4   :  { %965 = vmatpush.msra.mxu2 %v1882_v35  ;;  %859 = vmatpush.msra.mxu3 %v1892_v37 }
 0x7a5   :  { %v1364_v27 = vpop.eup %1363 }
 0x7a6   :  { %v2008_v29 = vmul.f32 %v1364_v27, %v774_v28  ;;  %966 = vmatpush.msra.mxu2 %v1887_v36  ;;  %860 = vmatpush.msra.mxu3 %v1901_v43 }
 0x7a8   :  { %817 = vmatmul.f32.vlgmr.msrb.gmra.mxu2 %v2008_v29  ;;  %861 = vmatpush.msra.mxu3 %v1905_v45 }
 0x7a9   :  { %967 = vmatpush.msra.mxu2 %v1892_v37 }
 0x7aa   :  { %862 = vmatpush.msra.mxu3 %v1910_v46 }
 0x7ab   :  { %968 = vmatpush.msra.mxu2 %v1901_v43 }
 0x7ac   :  { %863 = vmatpush.msra.mxu3 %v1914_v47 }
 0x7ad   :  { %969 = vmatpush.msra.mxu2 %v1905_v45 }
 0x7ae   :  { %864 = vmatpush.msra.mxu3 %v1917_v48 }
 0x7af   :  { %970 = vmatpush.msra.mxu2 %v1910_v46 }
 0x7b0   :  { %865 = vmatpush.msra.mxu3 %v1922_v49 }
 0x7b1   :  { %971 = vmatpush.msra.mxu2 %v1914_v47 }
 0x7b2   :  { %866 = vmatpush.msra.mxu3 %v1927_v50 }
 0x7b3   :  { %972 = vmatpush.msra.mxu2 %v1917_v48 }
 0x7b4   :  { %867 = vmatpush.msra.mxu3 %v1935_v51 }
 0x7b5   :  { %973 = vmatpush.msra.mxu2 %v1922_v49 }
 0x7b6   :  { %868 = vmatpush.msra.mxu3 %v1937_v52 }
 0x7b7   :  { %974 = vmatpush.msra.mxu2 %v1927_v50 }
 0x7b8   :  { %869 = vmatpush.msra.mxu3 %v1942_v53 }
 0x7b9   :  { %975 = vmatpush.msra.mxu2 %v1935_v51 }
 0x7ba   :  { %870 = vmatpush.msra.mxu3 %v1947_v54 }
 0x7bb   :  { %976 = vmatpush.msra.mxu2 %v1937_v52 }
 0x7bd   :  { %977 = vmatpush.msra.mxu2 %v1942_v53 }
 0x7bf   :  { %978 = vmatpush.msra.mxu2 %v1947_v54 }
 0x822   :  { %v568_v57 = vpop.f32.mrf.mxu2 }
 0x823   :  { %v571_v58 = vadd.f32 %v568_v57, %v129_v30 }
 0x825   :  { %1365 = vtanh.f32 %v571_v58 }
 0x82b   :  { %v1366_v0 = vpop.eup %1365  ;;  %v818_v1 = vpop.f32.mrf.mxu2 }
 0x82c   :  { %v573_v3 = vmul.f32 %v1366_v0, %v1712_v42  ;;  %v821_v4 = vadd.f32 %v818_v1, %v697_v33 }
 0x82e   :  { %1367 = vtanh.f32 %v821_v4  ;;  %v574_v5 = vadd.f32 %v573_v3, %v1715_v44 }
 0x830   :  { %579 = vrot.lane.b32.xlu1 %v574_v5, %s1465_s19  ;;  %575 = vrot.lane.b32.xlu0 %v574_v5, %s1464_s18  ;;  %v581_v20 = vmul.f32 %v574_v5, %v1997_v17 }
 0x834   :  { %v1368_v9 = vpop.eup %1367 }
 0x835   :  { %v823_v10 = vmul.f32 %v1368_v9, %v1712_v42 }
 0x837   :  { %v824_v11 = vadd.f32 %v823_v10, %v1715_v44 }
 0x838   :  { %577 = vrot.lane.b32.xlu1 %v574_v5, %s1463_s17 }
 0x839   :  { %825 = vrot.lane.b32.xlu2 %v824_v11, %s1464_s18  ;;  %829 = vrot.lane.b32.xlu0 %v824_v11, %s1465_s19  ;;  %v831_v27 = vmul.f32 %v824_v11, %v2002_v26 }
 0x841   :  { %827 = vrot.lane.b32.xlu2 %v824_v11, %s1463_s17 }
 0x893   :  { %v826_v24 = vpop.permute.xlu2 %825 }
 0x89b   :  { %v828_v59 = vpop.permute.xlu2 %827 }
 0x8a2   :  { %v580_v18 = vpop.permute.xlu1 %579  ;;  %v576_v19 = vpop.permute.xlu0 %575 }
 0x8a3   :  { %v582_v21 = vmul.f32 %v580_v18, %v576_v19 }
 0x8a5   :  { %v583_v22 = vadd.f32 %v582_v21, %v581_v20 }
 0x8a7   :  { %v2056_v23 = vsel %vm60_vm1, %v583_v22, 0.0  ;;  %v1240_v22 = vld [vmem:[#allocation6 + $0x78] sm:$0xff] }
 0x8a8   :  { %1369 = vtanh.f32 %v2056_v23 }
 0x8aa   :  { %v578_v55 = vpop.permute.xlu1 %577 }
 0x8ab   :  { %v830_v25 = vpop.permute.xlu0 %829 }
 0x8ac   :  { %v832_v28 = vmul.f32 %v830_v25, %v826_v24  ;;  %v1239_v24 = vld [vmem:[#allocation6 + $0x70] sm:$0xff]  ;;  %v1238_v25 = vld [vmem:[#allocation6 + $0x68] sm:$0xff] }
 0x8ae   :  { %v1370_v30 = vpop.eup %1369  ;;  %v833_v56 = vadd.f32 %v832_v28, %v831_v27  ;;  %v1237_v27 = vld [vmem:[#allocation6 + $0x60] sm:$0xff]  ;;  %v1236_v28 = vld [vmem:[#allocation6 + $0x58] sm:$0xff] }
 0x8af   :  { %v586_v57 = vmul.f32 %v1370_v30, %v578_v55  ;;  %v1235_v30 = vld [vmem:[#allocation6 + $0x50] sm:$0xff]  ;;  %v1234_v55 = vld [vmem:[#allocation6 + $0x48] sm:$0xff] }
 0x8b0   :  { %v834_v17 = vsel %vm60_vm1, %v833_v56, 0.0  ;;  %v1233_v56 = vld [vmem:[#allocation6 + $0x40] sm:$0xff] }
 0x8b1   :  { %1371 = vtanh.f32 %v834_v17  ;;  %623 = vmatmul.f32.vlgmr.msrb.gmra.mxu3 %v586_v57  ;;  %713 = vmatmul.f32.gmra.mxu0 %v586_v57  ;;  %v1232_v57 = vld [vmem:[#allocation6 + $0x38] sm:$0xff] }
 0x8b2   :  { %1017 = vmatpush.msrb.mxu3 %v1876_v31  ;;  %v132_v31 = vadd.f32 %v1706_v34, %v1835_v41 }
 0x8b4   :  { %1018 = vmatpush.msrb.mxu3 %v1878_v32 }
 0x8b6   :  { %1019 = vmatpush.msrb.mxu3 %v1882_v35 }
 0x8b7   :  { %v1372_v58 = vpop.eup %1371 }
 0x8b8   :  { %v2065_v26 = vmul.f32 %v1372_v58, %v828_v59  ;;  %1020 = vmatpush.msrb.mxu3 %v1887_v36  ;;  %v699_v36 = vpop.f32.mrf.mxu0  ;;  %v1230_v58 = vld [vmem:[#allocation6 + $0x28] sm:$0xff]  ;;  %v1229_v59 = vld [vmem:[#allocation6 + $0x20] sm:$0xff] }
 0x8ba   :  { %871 = vmatmul.f32.vlgmr.msra.gmra.mxu3 %v2065_v26 }
 0x8bb   :  { %1021 = vmatpush.msrb.mxu3 %v1892_v37  ;;  %v700_v37 = vadd.f32 %v1982_v2, %v699_v36  ;;  %v1225_v36 = vld [vmem:[#allocation6] sm:$0xff] }
 0x8bd   :  { %1022 = vmatpush.msrb.mxu3 %v1901_v43 }
 0x8bf   :  { %1023 = vmatpush.msrb.mxu3 %v1905_v45 }
 0x8c0   :  { %v702_v61 = vpop.f32.mrf.mxu0 }
 0x8c1   :  { %1024 = vmatpush.msrb.mxu3 %v1910_v46  ;;  %v703_v62 = vadd.f32 %v1982_v2, %v702_v61 }
 0x8c3   :  { %1025 = vmatpush.msrb.mxu3 %v1914_v47 }
 0x8c5   :  { %1026 = vmatpush.msrb.mxu3 %v1917_v48 }
 0x8c7   :  { %1027 = vmatpush.msrb.mxu3 %v1922_v49 }
 0x8c8   :  { %v705_v11 = vpop.f32.mrf.mxu0 }
 0x8c9   :  { %1028 = vmatpush.msrb.mxu3 %v1927_v50  ;;  %v706_v12 = vadd.f32 %v1982_v2, %v705_v11 }
 0x8cb   :  { %1029 = vmatpush.msrb.mxu3 %v1935_v51 }
 0x8cd   :  { %1030 = vmatpush.msrb.mxu3 %v1937_v52 }
 0x8cf   :  { %1031 = vmatpush.msrb.mxu3 %v1942_v53 }
 0x8d1   :  { %1032 = vmatpush.msrb.mxu3 %v1947_v54 }
 0x8d3   :  { %1245 = vmatpush.msra.mxu3 %v1240_v22 }
 0x8d5   :  { %1246 = vmatpush.msra.mxu3 %v1239_v24 }
 0x8d7   :  { %1247 = vmatpush.msra.mxu3 %v1238_v25 }
 0x8d9   :  { %1248 = vmatpush.msra.mxu3 %v1237_v27 }
 0x8db   :  { %1249 = vmatpush.msra.mxu3 %v1236_v28 }
 0x8dd   :  { %1250 = vmatpush.msra.mxu3 %v1235_v30 }
 0x8df   :  { %1251 = vmatpush.msra.mxu3 %v1234_v55 }
 0x8e1   :  { %1252 = vmatpush.msra.mxu3 %v1233_v56 }
 0x8e3   :  { %1253 = vmatpush.msra.mxu3 %v1232_v57 }
 0x934   :  { %v624_v32 = vpop.f32.mrf.mxu3 }
 0x935   :  { %v627_v35 = vadd.f32 %v624_v32, %v132_v31  ;;  %v1228_v31 = vld [vmem:[#allocation6 + $0x18] sm:$0xff]  ;;  %v1227_v32 = vld [vmem:[#allocation6 + $0x10] sm:$0xff] }
 0x93d   :  { %v872_v43 = vpop.f32.mrf.mxu3 }
 0x93e   :  { %v875_v45 = vadd.f32 %v872_v43, %v700_v37 }
 0x940   :  { %1373 = vtanh.f32 %v875_v45 }
 0x946   :  { %v1374_v46 = vpop.eup %1373 }
 0x947   :  { %v877_v47 = vmul.f32 %v1374_v46, %v1712_v42 }
 0x949   :  { %v878_v48 = vadd.f32 %v877_v47, %v1715_v44 }
 0x94b   :  { %881 = vrot.lane.b32.xlu2 %v878_v48, %s1463_s17  ;;  %883 = vrot.lane.b32.xlu1 %v878_v48, %s1465_s19  ;;  %v885_v49 = vmul.f32 %v878_v48, %v834_v17  ;;  %v1231_v17 = vld [vmem:[#allocation6 + $0x30] sm:$0xff] }
 0x94c   :  { %879 = vrot.lane.b32.xlu0 %v878_v48, %s1464_s18  ;;  %1254 = vmatpush.msra.mxu3 %v1231_v17 }
 0x94e   :  { %1255 = vmatpush.msra.mxu3 %v1230_v58 }
 0x950   :  { %1256 = vmatpush.msra.mxu3 %v1229_v59 }
 0x952   :  { %1257 = vmatpush.msra.mxu3 %v1228_v31  ;;  %v1124_v31 = vld [vmem:[#allocation4 + $0xf8] sm:$0xff] }
 0x953   :  { %1125 = vmatpush.msrb.mxu1 %v1124_v31  ;;  %1179 = vmatpush.msrb.mxu2 %v1124_v31 }
 0x954   :  { %1258 = vmatpush.msra.mxu3 %v1227_v32  ;;  %v1123_v32 = vld [vmem:[#allocation4 + $0xf0] sm:$0xff] }
 0x955   :  { %1126 = vmatpush.msrb.mxu1 %v1123_v32  ;;  %1180 = vmatpush.msrb.mxu2 %v1123_v32 }
 0x9a5   :  { %v882_v54 = vpop.permute.xlu2 %881 }
 0x9bd   :  { %v884_v34 = vpop.permute.xlu1 %883 }
 0x9be   :  { %v880_v41 = vpop.permute.xlu0 %879 }
 0x9bf   :  { %v886_v50 = vmul.f32 %v884_v34, %v880_v41 }
 0x9c1   :  { %v887_v51 = vadd.f32 %v886_v50, %v885_v49 }
 0x9c3   :  { %v888_v52 = vsel %vm60_vm1, %v887_v51, 0.0 }
 0x9c4   :  { %1375 = vtanh.f32 %v888_v52 }
 0x9ca   :  { %v1376_v53 = vpop.eup %1375 }
 0x9cb   :  { %v2091_v60 = vmul.f32 %v1376_v53, %v882_v54 }
 0x9cd   :  { %925 = vmatmul.f32.vlgmr.msra.gmra.mxu1 %v2091_v60 }
 0xa4a   :  { %v926_v63 = vpop.f32.mrf.mxu1 }
 0xa4b   :  { %v929_v33 = vadd.f32 %v926_v63, %v703_v62 }
 0xa4d   :  { %1377 = vtanh.f32 %v929_v33 }
 0xa53   :  { %v1378_v0 = vpop.eup %1377 }
 0xa54   :  { %v931_v1 = vmul.f32 %v1378_v0, %v1712_v42 }
 0xa56   :  { %v932_v40 = vadd.f32 %v931_v1, %v1715_v44 }
 0xa58   :  { %935 = vrot.lane.b32.xlu2 %v932_v40, %s1463_s17  ;;  %937 = vrot.lane.b32.xlu1 %v932_v40, %s1465_s19  ;;  %v939_v5 = vmul.f32 %v932_v40, %v888_v52 }
 0xa59   :  { %933 = vrot.lane.b32.xlu0 %v932_v40, %s1464_s18 }
 0xab2   :  { %v936_v38 = vpop.permute.xlu2 %935 }
 0xaca   :  { %v938_v3 = vpop.permute.xlu1 %937 }
 0xacb   :  { %v934_v4 = vpop.permute.xlu0 %933 }
 0xacc   :  { %v940_v6 = vmul.f32 %v938_v3, %v934_v4  ;;  %v2129_v3 = vld [vmem:[%s2213_s5] ss:$0 sm:$0xff] }
 0xace   :  { %v941_v7 = vadd.f32 %v940_v6, %v939_v5 }
 0xad0   :  { %v942_v8 = vsel %vm60_vm1, %v941_v7, 0.0 }
 0xad1   :  { %1379 = vtanh.f32 %v942_v8 }
 0xad7   :  { %v1380_v9 = vpop.eup %1379 }
 0xad8   :  { %v2102_v10 = vmul.f32 %v1380_v9, %v936_v38 }
 0xada   :  { %979 = vmatmul.f32.vlgmr.msra.gmra.mxu2 %v2102_v10 }
 0xb5d   :  { %v980_v13 = vpop.f32.mrf.mxu2 }
 0xb5e   :  { %v983_v14 = vadd.f32 %v980_v13, %v706_v12 }
 0xb60   :  { %1381 = vtanh.f32 %v983_v14 }
 0xb61   :  { %1383 = vtanh.f32 %v627_v35  ;;  %v1226_v35 = vld [vmem:[#allocation6 + $0x8] sm:$0xff] }
 0xb62   :  { %1259 = vmatpush.msra.mxu3 %v1226_v35  ;;  %v1122_v35 = vld [vmem:[#allocation4 + $0xe8] sm:$0xff] }
 0xb63   :  { %1127 = vmatpush.msrb.mxu1 %v1122_v35  ;;  %1181 = vmatpush.msrb.mxu2 %v1122_v35 }
 0xb64   :  { %1260 = vmatpush.msra.mxu3 %v1225_v36  ;;  %v1121_v36 = vld [vmem:[#allocation4 + $0xe0] sm:$0xff] }
 0xb65   :  { %1128 = vmatpush.msrb.mxu1 %v1121_v36  ;;  %1182 = vmatpush.msrb.mxu2 %v1121_v36 }
 0xb66   :  { %v1382_v15 = vpop.eup %1381 }
 0xb67   :  { %v985_v16 = vmul.f32 %v1382_v15, %v1712_v42  ;;  %v1384_v19 = vpop.eup %1383 }
 0xb68   :  { %v629_v20 = vmul.f32 %v1384_v19, %v1712_v42 }
 0xb69   :  { %v986_v18 = vadd.f32 %v985_v16, %v1715_v44 }
 0xb6a   :  { %v630_v21 = vadd.f32 %v629_v20, %v1715_v44 }
 0xb6b   :  { %989 = vrot.lane.b32.xlu2 %v986_v18, %s1463_s17  ;;  %991 = vrot.lane.b32.xlu1 %v986_v18, %s1465_s19  ;;  %v993_v45 = vmul.f32 %v986_v18, %v942_v8 }
 0xb6c   :  { %987 = vrot.lane.b32.xlu0 %v986_v18, %s1464_s18  ;;  %v637_v49 = vmul.f32 %v630_v21, %v2056_v23  ;;  %v708_v23 = vpop.f32.mrf.mxu0 }
 0xb6d   :  { %v709_v0 = vadd.f32 %v1982_v2, %v708_v23 }
 0xb73   :  { %635 = vrot.lane.b32.xlu1 %v630_v21, %s1465_s19 }
 0xb74   :  { %631 = vrot.lane.b32.xlu0 %v630_v21, %s1464_s18  ;;  %v711_v24 = vpop.f32.mrf.mxu0 }
 0xb75   :  { %v712_v28 = vadd.f32 %v1982_v2, %v711_v24 }
 0xb7b   :  { %633 = vrot.lane.b32.xlu1 %v630_v21, %s1463_s17 }
 0xb7c   :  { %v2161_v25 = vpop.f32.mrf.mxu0 }
 0xbc5   :  { %v990_v53 = vpop.permute.xlu2 %989 }
 0xbdd   :  { %v992_v37 = vpop.permute.xlu1 %991 }
 0xbde   :  { %v988_v43 = vpop.permute.xlu0 %987 }
 0xbdf   :  { %v994_v46 = vmul.f32 %v992_v37, %v988_v43  ;;  %v1120_v37 = vld [vmem:[#allocation4 + $0xd8] sm:$0xff]  ;;  %v1119_v43 = vld [vmem:[#allocation4 + $0xd0] sm:$0xff] }
 0xbe0   :  { %1129 = vmatpush.msrb.mxu1 %v1120_v37  ;;  %1183 = vmatpush.msrb.mxu2 %v1120_v37 }
 0xbe1   :  { %v995_v47 = vadd.f32 %v994_v46, %v993_v45  ;;  %v1118_v45 = vld [vmem:[#allocation4 + $0xc8] sm:$0xff]  ;;  %v1117_v46 = vld [vmem:[#allocation4 + $0xc0] sm:$0xff] }
 0xbe2   :  { %1130 = vmatpush.msrb.mxu1 %v1119_v43  ;;  %1184 = vmatpush.msrb.mxu2 %v1119_v43 }
 0xbe3   :  { %v996_v48 = vsel %vm60_vm1, %v995_v47, 0.0  ;;  %v1116_v47 = vld [vmem:[#allocation4 + $0xb8] sm:$0xff] }
 0xbe4   :  { %1385 = vtanh.f32 %v996_v48  ;;  %1131 = vmatpush.msrb.mxu1 %v1118_v45  ;;  %1185 = vmatpush.msrb.mxu2 %v1118_v45 }
 0xbe5   :  { %v636_v34 = vpop.permute.xlu1 %635 }
 0xbe6   :  { %v632_v41 = vpop.permute.xlu0 %631  ;;  %1132 = vmatpush.msrb.mxu1 %v1117_v46  ;;  %1186 = vmatpush.msrb.mxu2 %v1117_v46 }
 0xbe7   :  { %v638_v50 = vmul.f32 %v636_v34, %v632_v41  ;;  %v1114_v34 = vld [vmem:[#allocation4 + $0xa8] sm:$0xff]  ;;  %v1113_v41 = vld [vmem:[#allocation4 + $0xa0] sm:$0xff] }
 0xbe8   :  { %1133 = vmatpush.msrb.mxu1 %v1116_v47  ;;  %1187 = vmatpush.msrb.mxu2 %v1116_v47 }
 0xbe9   :  { %v639_v51 = vadd.f32 %v638_v50, %v637_v49  ;;  %v1112_v49 = vld [vmem:[#allocation4 + $0x98] sm:$0xff]  ;;  %v1111_v50 = vld [vmem:[#allocation4 + $0x90] sm:$0xff] }
 0xbea   :  { %v1386_v52 = vpop.eup %1385 }
 0xbeb   :  { %v640_v54 = vsel %vm60_vm1, %v639_v51, 0.0  ;;  %v998_v61 = vmul.f32 %v1386_v52, %v990_v53  ;;  %v1110_v51 = vld [vmem:[#allocation4 + $0x88] sm:$0xff]  ;;  %v1109_v52 = vld [vmem:[#allocation4 + $0x80] sm:$0xff] }
 0xbec   :  { %1387 = vtanh.f32 %v640_v54 }
 0xbed   :  { %1033 = vmatmul.f32.vlgmr.msrb.gmra.mxu3 %v998_v61  ;;  %v634_v63 = vpop.permute.xlu1 %633 }
 0xbf2   :  { %v1388_v62 = vpop.eup %1387 }
 0xbf3   :  { %v642_v33 = vmul.f32 %v1388_v62, %v634_v63 }
 0xbf5   :  { %716 = vmatmul.f32.gmra.mxu0 %v642_v33  ;;  %1261 = vmatmul.f32.vlgmr.msra.gmra.mxu3 %v2008_v29 }
 0xbfd   :  { %1264 = vmatmul.f32.gmra.mxu3 %v2065_v26 }
 0xc05   :  { %1267 = vmatmul.f32.gmra.mxu3 %v2091_v60 }
 0xc0d   :  { %1270 = vmatmul.f32.gmra.mxu3 %v2102_v10 }
 0xc15   :  { %1273 = vmatmul.f32.gmra.mxu3 %v998_v61 }
 0xc70   :  { %v1034_v1 = vpop.f32.mrf.mxu3 }
 0xc71   :  { %v1037_v40 = vadd.f32 %v1034_v1, %v709_v0 }
 0xc72   :  { %v2163_v27 = vpop.f32.mrf.mxu0 }
 0xc73   :  { %1389 = vtanh.f32 %v1037_v40  ;;  %v715_v40 = vadd.f32 %v1982_v2, %v2161_v25 }
 0xc78   :  { %v1262_v4 = vpop.f32.mrf.mxu3 }
 0xc79   :  { %v1390_v29 = vpop.eup %1389  ;;  %v1263_v26 = vadd.f32 %v2129_v3, %v1262_v4 }
 0xc7a   :  { %v1039_v60 = vmul.f32 %v1390_v29, %v1712_v42 }
 0xc7b   :  { %1289 = vst [vmem:[%s2214_s6] sm:$0xff] %v1263_v26 }
 0xc7c   :  { %v1040_v5 = vadd.f32 %v1039_v60, %v1715_v44 }
 0xc7e   :  { %1041 = vrot.lane.b32.xlu2 %v1040_v5, %s1464_s18  ;;  %1045 = vrot.lane.b32.xlu0 %v1040_v5, %s1465_s19  ;;  %v1047_v15 = vmul.f32 %v1040_v5, %v996_v48  ;;  %v1115_v48 = vld [vmem:[#allocation4 + $0xb0] sm:$0xff] }
 0xc7f   :  { %1134 = vmatpush.msrb.mxu1 %v1115_v48  ;;  %1188 = vmatpush.msrb.mxu2 %v1115_v48 }
 0xc80   :  { %v1265_v6 = vpop.f32.mrf.mxu3 }
 0xc81   :  { %v1266_v7 = vadd.f32 %v2129_v3, %v1265_v6  ;;  %1135 = vmatpush.msrb.mxu1 %v1114_v34  ;;  %1189 = vmatpush.msrb.mxu2 %v1114_v34 }
 0xc83   :  { %1290 = vst [vmem:[%s2214_s6 + $0x8] sm:$0xff] %v1266_v7  ;;  %1136 = vmatpush.msrb.mxu1 %v1113_v41  ;;  %1190 = vmatpush.msrb.mxu2 %v1113_v41 }
 0xc85   :  { %1137 = vmatpush.msrb.mxu1 %v1112_v49  ;;  %1191 = vmatpush.msrb.mxu2 %v1112_v49 }
 0xc86   :  { %1043 = vrot.lane.b32.xlu2 %v1040_v5, %s1463_s17 }
 0xc87   :  { %1138 = vmatpush.msrb.mxu1 %v1111_v50  ;;  %1192 = vmatpush.msrb.mxu2 %v1111_v50 }
 0xc88   :  { %v1268_v8 = vpop.f32.mrf.mxu3 }
 0xc89   :  { %v1269_v9 = vadd.f32 %v2129_v3, %v1268_v8  ;;  %1139 = vmatpush.msrb.mxu1 %v1110_v51  ;;  %1193 = vmatpush.msrb.mxu2 %v1110_v51 }
 0xc8b   :  { %1291 = vst [vmem:[%s2214_s6 + $0x10] sm:$0xff] %v1269_v9  ;;  %1140 = vmatpush.msrb.mxu1 %v1109_v52  ;;  %1194 = vmatpush.msrb.mxu2 %v1109_v52 }
 0xc90   :  { %v1271_v38 = vpop.f32.mrf.mxu3 }
 0xc91   :  { %v1272_v10 = vadd.f32 %v2129_v3, %v1271_v38 }
 0xc93   :  { %1292 = vst [vmem:[%s2214_s6 + $0x18] sm:$0xff] %v1272_v10 }
 0xc98   :  { %v1274_v11 = vpop.f32.mrf.mxu3 }
 0xc99   :  { %v1275_v12 = vadd.f32 %v2129_v3, %v1274_v11 }
 0xc9b   :  { %1293 = vst [vmem:[%s2214_s6 + $0x20] sm:$0xff] %v1275_v12 }
 0xcd8   :  { %v1042_v13 = vpop.permute.xlu2 %1041 }
 0xce0   :  { %v1044_v21 = vpop.permute.xlu2 %1043 }
 0xcf0   :  { %v1046_v14 = vpop.permute.xlu0 %1045 }
 0xcf1   :  { %v1048_v16 = vmul.f32 %v1046_v14, %v1042_v13 }
 0xcf3   :  { %v1049_v18 = vadd.f32 %v1048_v16, %v1047_v15  ;;  %v718_v16 = vadd.f32 %v1982_v2, %v2163_v27 }
 0xcf5   :  { %v2158_v19 = vsel %vm60_vm1, %v1049_v18, 0.0 }
 0xcf6   :  { %1391 = vtanh.f32 %v2158_v19 }
 0xcfc   :  { %v1392_v20 = vpop.eup %1391 }
 0xcfd   :  { %v1052_v22 = vmul.f32 %v1392_v20, %v1044_v21 }
 0xcff   :  { %1087 = vmatmul.f32.vlgmr.msrb.gmra.mxu0 %v1052_v22  ;;  %1276 = vmatmul.f32.gmra.mxu3 %v1052_v22 }
 0xd7c   :  { %v1088_v30 = vpop.f32.mrf.mxu0 }
 0xd7d   :  { %v1091_v55 = vadd.f32 %v1088_v30, %v712_v28 }
 0xd7f   :  { %1393 = vtanh.f32 %v1091_v55 }
 0xd82   :  { %v1277_v56 = vpop.f32.mrf.mxu3 }
 0xd83   :  { %v1278_v57 = vadd.f32 %v2129_v3, %v1277_v56 }
 0xd85   :  { %v1394_v17 = vpop.eup %1393  ;;  %1294 = vst [vmem:[%s2214_s6 + $0x28] sm:$0xff] %v1278_v57 }
 0xd86   :  { %v1093_v58 = vmul.f32 %v1394_v17, %v1712_v42 }
 0xd88   :  { %v1094_v59 = vadd.f32 %v1093_v58, %v1715_v44 }
 0xd8a   :  { %1097 = vrot.lane.b32.xlu2 %v1094_v59, %s1463_s17  ;;  %1099 = vrot.lane.b32.xlu1 %v1094_v59, %s1465_s19  ;;  %v1101_v61 = vmul.f32 %v1094_v59, %v2158_v19 }
 0xd8b   :  { %1095 = vrot.lane.b32.xlu0 %v1094_v59, %s1464_s18 }
 0xde4   :  { %v1098_v0 = vpop.permute.xlu2 %1097 }
 0xdfc   :  { %v1100_v53 = vpop.permute.xlu1 %1099 }
 0xdfd   :  { %v1096_v54 = vpop.permute.xlu0 %1095 }
 0xdfe   :  { %v1102_v62 = vmul.f32 %v1100_v53, %v1096_v54 }
 0xe00   :  { %v1103_v63 = vadd.f32 %v1102_v62, %v1101_v61 }
 0xe02   :  { %v1104_v33 = vsel %vm60_vm1, %v1103_v63, 0.0 }
 0xe03   :  { %1395 = vtanh.f32 %v1104_v33 }
 0xe09   :  { %v1396_v23 = vpop.eup %1395 }
 0xe0a   :  { %v1106_v1 = vmul.f32 %v1396_v23, %v1098_v0 }
 0xe0c   :  { %1141 = vmatmul.f32.vlgmr.msrb.gmra.mxu1 %v1106_v1  ;;  %1279 = vmatmul.f32.gmra.mxu3 %v1106_v1 }
 0xe89   :  { %v1142_v4 = vpop.f32.mrf.mxu1 }
 0xe8a   :  { %v1145_v29 = vadd.f32 %v1142_v4, %v715_v40 }
 0xe8c   :  { %1397 = vtanh.f32 %v1145_v29 }
 0xe8f   :  { %v1280_v26 = vpop.f32.mrf.mxu3 }
 0xe90   :  { %v1281_v60 = vadd.f32 %v2129_v3, %v1280_v26 }
 0xe92   :  { %v1398_v5 = vpop.eup %1397  ;;  %1295 = vst [vmem:[%s2214_s6 + $0x30] sm:$0xff] %v1281_v60 }
 0xe93   :  { %v1147_v6 = vmul.f32 %v1398_v5, %v1712_v42 }
 0xe95   :  { %v1148_v7 = vadd.f32 %v1147_v6, %v1715_v44 }
 0xe97   :  { %1151 = vrot.lane.b32.xlu2 %v1148_v7, %s1463_s17  ;;  %1153 = vrot.lane.b32.xlu1 %v1148_v7, %s1465_s19  ;;  %v1155_v38 = vmul.f32 %v1148_v7, %v1104_v33 }
 0xe98   :  { %1149 = vrot.lane.b32.xlu0 %v1148_v7, %s1464_s18 }
 0xef1   :  { %v1152_v14 = vpop.permute.xlu2 %1151 }
 0xf09   :  { %v1154_v8 = vpop.permute.xlu1 %1153 }
 0xf0a   :  { %v1150_v9 = vpop.permute.xlu0 %1149 }
 0xf0b   :  { %v1156_v10 = vmul.f32 %v1154_v8, %v1150_v9 }
 0xf0d   :  { %v1157_v11 = vadd.f32 %v1156_v10, %v1155_v38 }
 0xf0f   :  { %v1158_v12 = vsel %vm60_vm1, %v1157_v11, 0.0 }
 0xf10   :  { %1399 = vtanh.f32 %v1158_v12 }
 0xf16   :  { %v1400_v13 = vpop.eup %1399 }
 0xf17   :  { %v1160_v15 = vmul.f32 %v1400_v13, %v1152_v14 }
 0xf19   :  { %1195 = vmatmul.f32.vlgmr.msrb.gmra.mxu2 %v1160_v15  ;;  %1282 = vmatmul.f32.gmra.mxu3 %v1160_v15 }
 0xf9c   :  { %v1196_v18 = vpop.f32.mrf.mxu2  ;;  %v1283_v19 = vpop.f32.mrf.mxu3 }
 0xf9d   :  { %v1199_v20 = vadd.f32 %v1196_v18, %v718_v16  ;;  %v1284_v21 = vadd.f32 %v2129_v3, %v1283_v19 }
 0xf9f   :  { %1401 = vtanh.f32 %v1199_v20  ;;  %1296 = vst [vmem:[%s2214_s6 + $0x38] sm:$0xff] %v1284_v21 }
 0xfa5   :  { %v1402_v22 = vpop.eup %1401 }
 0xfa6   :  { %v1201_v24 = vmul.f32 %v1402_v22, %v1712_v42 }
 0xfa8   :  { %v1202_v25 = vadd.f32 %v1201_v24, %v1715_v44 }
 0xfaa   :  { %1205 = vrot.lane.b32.xlu2 %v1202_v25, %s1463_s17  ;;  %1207 = vrot.lane.b32.xlu1 %v1202_v25, %s1465_s19  ;;  %v1209_v28 = vmul.f32 %v1202_v25, %v1158_v12 }
 0xfab   :  { %1203 = vrot.lane.b32.xlu0 %v1202_v25, %s1464_s18 }
0x1004   :  { %v1206_v17 = vpop.permute.xlu2 %1205 }
0x101c   :  { %v1208_v2 = vpop.permute.xlu1 %1207 }
0x101d   :  { %v1204_v27 = vpop.permute.xlu0 %1203 }
0x101e   :  { %v1210_v30 = vmul.f32 %v1208_v2, %v1204_v27 }
0x1020   :  { %v1211_v55 = vadd.f32 %v1210_v30, %v1209_v28 }
0x1022   :  { %v1212_v56 = vsel %vm60_vm1, %v1211_v55, 0.0 }
0x1023   :  { %1403 = vtanh.f32 %v1212_v56 }
0x1029   :  { %v1404_v57 = vpop.eup %1403 }
0x102a   :  { %v1214_v42 = vmul.f32 %v1404_v57, %v1206_v17 }
0x102c   :  { %1285 = vmatmul.f32.gmra.mxu3 %v1214_v42 }
0x10af   :  { %v1286_v44 = vpop.f32.mrf.mxu3 }
0x10b0   :  { %v1287_v58 = vadd.f32 %v2129_v3, %v1286_v44 }
0x10b2   :  { %1297 = vst [vmem:[%s2214_s6 + $0x40] sm:$0xff] %v1287_v58 }
0x10b3   :  { %1302 = vsyncpa [#allocation5], 1 }
0x10b4   :  { %1303 = vsyncpa [#allocation7], 1 }

</bundles_post_ra>
